<compile_context>
chip_gen: v7x
topology: tpu7x:2x2x1
jax: 0.10.0
libtpu: 0.0.40
codegen_flags: <defaults>
</compile_context>

<pallas_src>
import math
import jax
import jax.numpy as jnp
from jax.experimental import pallas as pl
from jax.experimental.pallas import tpu as pltpu

# ---- model hyper-parameters (small, consistent with the module) ----
B, S = 2, 8            # batch, sequence length
INPUT_DIM = 4
N_HEADS = 4
HIDDEN = 32            # dim_feedforward
NUM_LAYERS = 2
D_MODEL = 32           # transformer_dim
HEAD_DIM = D_MODEL // N_HEADS
LN_EPS = 1e-5


def _mm(a, w):
    """a @ w, with w already stored (in_features, out_features).

    Contracts the lane dim of `a` against the sublane dim of `w`, so Mosaic
    feeds the MXU directly without transposing the weight."""
    return jax.lax.dot_general(
        a, w, (((1,), (0,)), ((), ())), preferred_element_type=jnp.float32)


def _layernorm(x, g, b):
    mu = jnp.mean(x, axis=-1, keepdims=True)
    var = jnp.mean((x - mu) ** 2, axis=-1, keepdims=True)   # biased, like PyTorch
    return (x - mu) * jax.lax.rsqrt(var + LN_EPS) * g + b


def transformer_kernel(x_ref, pe_ref, tw_ref, tb_ref,
                       qw_ref, qb_ref, kw_ref, kb_ref, vw_ref, vb_ref,
                       opw_ref, opb_ref,
                       l1w_ref, l1b_ref, l2w_ref, l2b_ref,
                       g1_ref, be1_ref, g2_ref, be2_ref,
                       fcw_ref, fcb_ref, out_ref):
    # input: (B, S, INPUT_DIM) -> flatten tokens
    x2 = x_ref[...].reshape(B * S, INPUT_DIM).astype(jnp.float32)

    # transformation: Linear(input_dim -> d_model)
    h = _mm(x2, tw_ref[...]) + tb_ref[...]                    # (B*S, d)

    # positional encoding: (S, d) table broadcast over batch in-kernel
    h = (h.reshape(B, S, D_MODEL) + pe_ref[...]).reshape(B * S, D_MODEL)

    for l in range(NUM_LAYERS):
        # ---- self attention (post-LN TransformerEncoderLayer) ----
        # Separate, pre-transposed Q/K/V weights; 1/sqrt(head_dim) is already
        # folded into qw/qb, so no in-kernel scale multiply.
        q = _mm(h, qw_ref[l]) + qb_ref[l]                     # (B*S, d)
        k = _mm(h, kw_ref[l]) + kb_ref[l]
        v = _mm(h, vw_ref[l]) + vb_ref[l]
        q3 = q.reshape(B, S, D_MODEL)
        k3 = k.reshape(B, S, D_MODEL)
        v3 = v.reshape(B, S, D_MODEL)

        # Per-head einsums keep a single leading batch dim (robust Mosaic
        # lowering); head contexts are concatenated and projected with ONE
        # (B*S, d) @ (d, d) matmul.
        ctx_heads = []
        for hh in range(N_HEADS):
            sl = slice(hh * HEAD_DIM, (hh + 1) * HEAD_DIM)
            s = jnp.einsum('bqe,bke->bqk', q3[:, :, sl], k3[:, :, sl],
                           preferred_element_type=jnp.float32)   # (B,S,S)
            m = jnp.max(s, axis=-1, keepdims=True)
            e = jnp.exp(s - m)
            inv = pl.reciprocal(jnp.sum(e, axis=-1, keepdims=True), approx=True)
            p = e * inv
            ctx_heads.append(jnp.einsum('bqk,bke->bqe', p, v3[:, :, sl],
                                        preferred_element_type=jnp.float32))
        ctx = jnp.concatenate(ctx_heads, axis=-1).reshape(B * S, D_MODEL)
        attn = _mm(ctx, opw_ref[l]) + opb_ref[l]              # (B*S, d)

        h = _layernorm(h + attn, g1_ref[l], be1_ref[l])

        # ---- feed-forward ----
        ff = _mm(h, l1w_ref[l]) + l1b_ref[l]                  # (B*S, hidden)
        ff = jnp.maximum(ff, 0.0)                             # ReLU (PyTorch default)
        ff = _mm(ff, l2w_ref[l]) + l2b_ref[l]                 # (B*S, d)

        h = _layernorm(h + ff, g2_ref[l], be2_ref[l])

    # ---- mean over sequence dim, then fc: Linear(d_model -> 1) ----
    pooled = jnp.mean(h.reshape(B, S, D_MODEL), axis=1)       # (B, d)
    out = _mm(pooled, fcw_ref[...]) + fcb_ref[...]            # (B, 1)
    out_ref[...] = out.astype(out_ref.dtype)


def make_positional_encoding(max_len, d_model):
    # Reproduces the module exactly, including the *missing minus sign* in
    # div_term (as written in the PyTorch source).
    position = jnp.arange(max_len, dtype=jnp.float32)[:, None]
    div_term = jnp.exp(jnp.arange(0, d_model, 2, dtype=jnp.float32)
                       * (math.log(10000.0) / d_model))
    ang = position * div_term
    pe = jnp.zeros((max_len, d_model), dtype=jnp.float32)
    pe = pe.at[:, 0::2].set(jnp.sin(ang))
    pe = pe.at[:, 1::2].set(jnp.cos(ang))
    return pe                                                  # (max_len, d_model)


def build_params(key):
    """PyTorch-style parameter layout: weights are (out_features, in_features)."""
    def nrm(k, shape, scale=0.1):
        return scale * jax.random.normal(k, shape, dtype=jnp.float32)

    ks = jax.random.split(key, 10)
    params = dict(
        tw=nrm(ks[0], (D_MODEL, INPUT_DIM)),
        tb=nrm(ks[1], (1, D_MODEL)),
        ipw=nrm(ks[2], (NUM_LAYERS, 3 * D_MODEL, D_MODEL)),
        ipb=nrm(ks[3], (NUM_LAYERS, 1, 3 * D_MODEL)),
        opw=nrm(ks[4], (NUM_LAYERS, D_MODEL, D_MODEL)),
        opb=nrm(ks[5], (NUM_LAYERS, 1, D_MODEL)),
        l1w=nrm(ks[6], (NUM_LAYERS, HIDDEN, D_MODEL)),
        l1b=nrm(ks[7], (NUM_LAYERS, 1, HIDDEN)),
        l2w=nrm(ks[8], (NUM_LAYERS, D_MODEL, HIDDEN)),
        l2b=nrm(ks[9], (NUM_LAYERS, 1, D_MODEL)),
        g1=jnp.ones((NUM_LAYERS, 1, D_MODEL), jnp.float32),
        be1=jnp.zeros((NUM_LAYERS, 1, D_MODEL), jnp.float32),
        g2=jnp.ones((NUM_LAYERS, 1, D_MODEL), jnp.float32),
        be2=jnp.zeros((NUM_LAYERS, 1, D_MODEL), jnp.float32),
    )
    k_fc = jax.random.split(ks[0], 3)
    params['fcw'] = nrm(k_fc[1], (1, D_MODEL))
    params['fcb'] = nrm(k_fc[2], (1, 1))
    return params


def prepare_kernel_params(params):
    """Host-side, one-time prep: transpose weights to (in, out), split the
    fused in_proj into Q/K/V and fold the attention scale into Q."""
    scale = 1.0 / math.sqrt(HEAD_DIM)
    t = lambda w: jnp.transpose(w, (0, 2, 1))          # (L, out, in) -> (L, in, out)
    ipw, ipb = params['ipw'], params['ipb']
    return dict(
        tw=params['tw'].T,                             # (input_dim, d_model)
        tb=params['tb'],
        qw=t(ipw[:, 0:D_MODEL, :]) * scale,            # scale folded into Q
        qb=ipb[:, :, 0:D_MODEL] * scale,
        kw=t(ipw[:, D_MODEL:2 * D_MODEL, :]),
        kb=ipb[:, :, D_MODEL:2 * D_MODEL],
        vw=t(ipw[:, 2 * D_MODEL:, :]),
        vb=ipb[:, :, 2 * D_MODEL:],
        opw=t(params['opw']),
        opb=params['opb'],
        l1w=t(params['l1w']),
        l1b=params['l1b'],
        l2w=t(params['l2w']),
        l2b=params['l2b'],
        g1=params['g1'], be1=params['be1'],
        g2=params['g2'], be2=params['be2'],
        fcw=params['fcw'].T,                           # (d_model, 1)
        fcb=params['fcb'],
    )


def time_series_transformer(x, params):
    kp = prepare_kernel_params(params)
    pe = make_positional_encoding(100, D_MODEL)[:S]    # (S, d), broadcast in kernel

    inputs = (x, pe,
              kp['tw'], kp['tb'],
              kp['qw'], kp['qb'], kp['kw'], kp['kb'], kp['vw'], kp['vb'],
              kp['opw'], kp['opb'],
              kp['l1w'], kp['l1b'], kp['l2w'], kp['l2b'],
              kp['g1'], kp['be1'], kp['g2'], kp['be2'],
              kp['fcw'], kp['fcb'])

    vmem_spec = pl.BlockSpec(memory_space=pltpu.MemorySpace.VMEM)
    return pl.pallas_call(
        transformer_kernel,
        out_shape=jax.ShapeDtypeStruct((B, 1), jnp.float32),
        in_specs=[vmem_spec] * len(inputs),
        out_specs=vmem_spec,
    )(*inputs)


if __name__ == "__main__":
    key = jax.random.PRNGKey(0)
    k_x, k_p = jax.random.split(key)
    x = jax.random.normal(k_x, (B, S, INPUT_DIM), dtype=jnp.float32)
    params = build_params(k_p)

    out = time_series_transformer(x, params)
    jax.block_until_ready(out)
    assert out.shape == (B, 1), out.shape
    print("KERNEL_OK")
</pallas_src>

<mosaic_0001>
module attributes {stable_mosaic.version = 11 : i64} {
  func.func @transformer_kernel(%arg0: memref<2x8x4xf32, #tpu.memory_space<vmem>>, %arg1: memref<8x32xf32, #tpu.memory_space<vmem>>, %arg2: memref<4x32xf32, #tpu.memory_space<vmem>>, %arg3: memref<1x32xf32, #tpu.memory_space<vmem>>, %arg4: memref<2x32x32xf32, #tpu.memory_space<vmem>>, %arg5: memref<2x1x32xf32, #tpu.memory_space<vmem>>, %arg6: memref<2x32x32xf32, #tpu.memory_space<vmem>>, %arg7: memref<2x1x32xf32, #tpu.memory_space<vmem>>, %arg8: memref<2x32x32xf32, #tpu.memory_space<vmem>>, %arg9: memref<2x1x32xf32, #tpu.memory_space<vmem>>, %arg10: memref<2x32x32xf32, #tpu.memory_space<vmem>>, %arg11: memref<2x1x32xf32, #tpu.memory_space<vmem>>, %arg12: memref<2x32x32xf32, #tpu.memory_space<vmem>>, %arg13: memref<2x1x32xf32, #tpu.memory_space<vmem>>, %arg14: memref<2x32x32xf32, #tpu.memory_space<vmem>>, %arg15: memref<2x1x32xf32, #tpu.memory_space<vmem>>, %arg16: memref<2x1x32xf32, #tpu.memory_space<vmem>>, %arg17: memref<2x1x32xf32, #tpu.memory_space<vmem>>, %arg18: memref<2x1x32xf32, #tpu.memory_space<vmem>>, %arg19: memref<2x1x32xf32, #tpu.memory_space<vmem>>, %arg20: memref<32x1xf32, #tpu.memory_space<vmem>>, %arg21: memref<1x1xf32, #tpu.memory_space<vmem>>, %arg22: memref<2x1xf32, #tpu.memory_space<vmem>>) attributes {dimension_semantics = [], scalar_prefetch = 0 : i64, scratch_operands = 0 : i64, tpu.core_type = #tpu.core_type<tc>} {
    %c0 = arith.constant 0 : index
    %c0_0 = arith.constant 0 : index
    %c0_1 = arith.constant 0 : index
    %0 = vector.load %arg0[%c0, %c0_0, %c0_1] : memref<2x8x4xf32, #tpu.memory_space<vmem>>, vector<2x8x4xf32>
    %1 = vector.shape_cast %0 : vector<2x8x4xf32> to vector<16x4xf32>
    %c0_2 = arith.constant 0 : index
    %c0_3 = arith.constant 0 : index
    %2 = vector.load %arg2[%c0_2, %c0_3] : memref<4x32xf32, #tpu.memory_space<vmem>>, vector<4x32xf32>
    %cst = arith.constant dense<0.000000e+00> : vector<16x32xf32>
    %3 = tpu.matmul %1, %2, %cst {dimension_numbers = #tpu.dot_dimension_numbers<[1], [0], [0], [1], [0, 0, 1, 1], [], []>} : vector<16x4xf32>, vector<4x32xf32>, vector<16x32xf32> -> vector<16x32xf32>
    %c0_4 = arith.constant 0 : index
    %c0_5 = arith.constant 0 : index
    %4 = vector.load %arg3[%c0_4, %c0_5] : memref<1x32xf32, #tpu.memory_space<vmem>>, vector<1x32xf32>
    %5 = vector.broadcast %4 : vector<1x32xf32> to vector<16x32xf32>
    %6 = arith.addf %3, %5 : vector<16x32xf32>
    %7 = vector.shape_cast %6 : vector<16x32xf32> to vector<2x8x32xf32>
    %c0_6 = arith.constant 0 : index
    %c0_7 = arith.constant 0 : index
    %8 = vector.load %arg1[%c0_6, %c0_7] : memref<8x32xf32, #tpu.memory_space<vmem>>, vector<8x32xf32>
    %9 = vector.shape_cast %8 : vector<8x32xf32> to vector<1x8x32xf32>
    %10 = vector.broadcast %9 : vector<1x8x32xf32> to vector<2x8x32xf32>
    %11 = arith.addf %7, %10 : vector<2x8x32xf32>
    %12 = vector.shape_cast %11 : vector<2x8x32xf32> to vector<16x32xf32>
    %c0_8 = arith.constant 0 : index
    %c0_9 = arith.constant 0 : index
    %c0_10 = arith.constant 0 : index
    %13 = vector.load %arg4[%c0_8, %c0_9, %c0_10] : memref<2x32x32xf32, #tpu.memory_space<vmem>>, vector<1x32x32xf32>
    %14 = vector.shape_cast %13 : vector<1x32x32xf32> to vector<32x32xf32>
    %cst_11 = arith.constant dense<0.000000e+00> : vector<16x32xf32>
    %15 = tpu.matmul %12, %14, %cst_11 {dimension_numbers = #tpu.dot_dimension_numbers<[1], [0], [0], [1], [0, 0, 1, 1], [], []>} : vector<16x32xf32>, vector<32x32xf32>, vector<16x32xf32> -> vector<16x32xf32>
    %c0_12 = arith.constant 0 : index
    %c0_13 = arith.constant 0 : index
    %c0_14 = arith.constant 0 : index
    %16 = vector.load %arg5[%c0_12, %c0_13, %c0_14] : memref<2x1x32xf32, #tpu.memory_space<vmem>>, vector<1x1x32xf32>
    %17 = vector.shape_cast %16 : vector<1x1x32xf32> to vector<1x32xf32>
    %18 = vector.broadcast %17 : vector<1x32xf32> to vector<16x32xf32>
    %19 = arith.addf %15, %18 : vector<16x32xf32>
    %c0_15 = arith.constant 0 : index
    %c0_16 = arith.constant 0 : index
    %c0_17 = arith.constant 0 : index
    %20 = vector.load %arg6[%c0_15, %c0_16, %c0_17] : memref<2x32x32xf32, #tpu.memory_space<vmem>>, vector<1x32x32xf32>
    %21 = vector.shape_cast %20 : vector<1x32x32xf32> to vector<32x32xf32>
    %cst_18 = arith.constant dense<0.000000e+00> : vector<16x32xf32>
    %22 = tpu.matmul %12, %21, %cst_18 {dimension_numbers = #tpu.dot_dimension_numbers<[1], [0], [0], [1], [0, 0, 1, 1], [], []>} : vector<16x32xf32>, vector<32x32xf32>, vector<16x32xf32> -> vector<16x32xf32>
    %c0_19 = arith.constant 0 : index
    %c0_20 = arith.constant 0 : index
    %c0_21 = arith.constant 0 : index
    %23 = vector.load %arg7[%c0_19, %c0_20, %c0_21] : memref<2x1x32xf32, #tpu.memory_space<vmem>>, vector<1x1x32xf32>
    %24 = vector.shape_cast %23 : vector<1x1x32xf32> to vector<1x32xf32>
    %25 = vector.broadcast %24 : vector<1x32xf32> to vector<16x32xf32>
    %26 = arith.addf %22, %25 : vector<16x32xf32>
    %c0_22 = arith.constant 0 : index
    %c0_23 = arith.constant 0 : index
    %c0_24 = arith.constant 0 : index
    %27 = vector.load %arg8[%c0_22, %c0_23, %c0_24] : memref<2x32x32xf32, #tpu.memory_space<vmem>>, vector<1x32x32xf32>
    %28 = vector.shape_cast %27 : vector<1x32x32xf32> to vector<32x32xf32>
    %cst_25 = arith.constant dense<0.000000e+00> : vector<16x32xf32>
    %29 = tpu.matmul %12, %28, %cst_25 {dimension_numbers = #tpu.dot_dimension_numbers<[1], [0], [0], [1], [0, 0, 1, 1], [], []>} : vector<16x32xf32>, vector<32x32xf32>, vector<16x32xf32> -> vector<16x32xf32>
    %c0_26 = arith.constant 0 : index
    %c0_27 = arith.constant 0 : index
    %c0_28 = arith.constant 0 : index
    %30 = vector.load %arg9[%c0_26, %c0_27, %c0_28] : memref<2x1x32xf32, #tpu.memory_space<vmem>>, vector<1x1x32xf32>
    %31 = vector.shape_cast %30 : vector<1x1x32xf32> to vector<1x32xf32>
    %32 = vector.broadcast %31 : vector<1x32xf32> to vector<16x32xf32>
    %33 = arith.addf %29, %32 : vector<16x32xf32>
    %34 = vector.shape_cast %19 : vector<16x32xf32> to vector<2x8x32xf32>
    %35 = vector.shape_cast %26 : vector<16x32xf32> to vector<2x8x32xf32>
    %36 = vector.shape_cast %33 : vector<16x32xf32> to vector<2x8x32xf32>
    %37 = vector.extract_strided_slice %34 {offsets = [0, 0, 0], sizes = [2, 8, 8], strides = [1, 1, 1]} : vector<2x8x32xf32> to vector<2x8x8xf32>
    %38 = vector.extract_strided_slice %35 {offsets = [0, 0, 0], sizes = [2, 8, 8], strides = [1, 1, 1]} : vector<2x8x32xf32> to vector<2x8x8xf32>
    "tpu.trace_start"() <{level = 10 : i32, message = "bqe,bke->bqk"}> : () -> ()
    %cst_29 = arith.constant dense<0.000000e+00> : vector<2x8x8xf32>
    %39 = tpu.matmul %37, %38, %cst_29 {dimension_numbers = #tpu.dot_dimension_numbers<[2], [2], [1], [1], [0, 0, 0, 1, 1, 1], [0], [0]>} : vector<2x8x8xf32>, vector<2x8x8xf32>, vector<2x8x8xf32> -> vector<2x8x8xf32>
    "tpu.trace_stop"() : () -> ()
    %cst_30 = arith.constant dense<0xFF800000> : vector<2x8xf32>
    %40 = vector.multi_reduction <maximumf>, %39, %cst_30 [2] : vector<2x8x8xf32> to vector<2x8xf32>
    %41 = vector.shape_cast %40 : vector<2x8xf32> to vector<2x8x1xf32>
    %42 = vector.broadcast %41 : vector<2x8x1xf32> to vector<2x8x8xf32>
    %43 = arith.subf %39, %42 : vector<2x8x8xf32>
    %44 = math.exp %43 : vector<2x8x8xf32>
    %cst_31 = arith.constant dense<0.000000e+00> : vector<2x8xf32>
    %45 = vector.multi_reduction <add>, %44, %cst_31 [2] : vector<2x8x8xf32> to vector<2x8xf32>
    %46 = vector.shape_cast %45 : vector<2x8xf32> to vector<2x8x1xf32>
    %47 = tpu.reciprocal %46 {approx = true} : vector<2x8x1xf32> -> vector<2x8x1xf32>
    %48 = vector.broadcast %47 : vector<2x8x1xf32> to vector<2x8x8xf32>
    %49 = arith.mulf %44, %48 : vector<2x8x8xf32>
    %50 = vector.extract_strided_slice %36 {offsets = [0, 0, 0], sizes = [2, 8, 8], strides = [1, 1, 1]} : vector<2x8x32xf32> to vector<2x8x8xf32>
    "tpu.trace_start"() <{level = 10 : i32, message = "bqk,bke->bqe"}> : () -> ()
    %cst_32 = arith.constant dense<0.000000e+00> : vector<2x8x8xf32>
    %51 = tpu.matmul %49, %50, %cst_32 {dimension_numbers = #tpu.dot_dimension_numbers<[2], [1], [1], [2], [0, 0, 0, 1, 1, 2], [0], [0]>} : vector<2x8x8xf32>, vector<2x8x8xf32>, vector<2x8x8xf32> -> vector<2x8x8xf32>
    "tpu.trace_stop"() : () -> ()
    %52 = vector.extract_strided_slice %34 {offsets = [0, 0, 8], sizes = [2, 8, 8], strides = [1, 1, 1]} : vector<2x8x32xf32> to vector<2x8x8xf32>
    %53 = vector.extract_strided_slice %35 {offsets = [0, 0, 8], sizes = [2, 8, 8], strides = [1, 1, 1]} : vector<2x8x32xf32> to vector<2x8x8xf32>
    "tpu.trace_start"() <{level = 10 : i32, message = "bqe,bke->bqk"}> : () -> ()
    %cst_33 = arith.constant dense<0.000000e+00> : vector<2x8x8xf32>
    %54 = tpu.matmul %52, %53, %cst_33 {dimension_numbers = #tpu.dot_dimension_numbers<[2], [2], [1], [1], [0, 0, 0, 1, 1, 1], [0], [0]>} : vector<2x8x8xf32>, vector<2x8x8xf32>, vector<2x8x8xf32> -> vector<2x8x8xf32>
    "tpu.trace_stop"() : () -> ()
    %cst_34 = arith.constant dense<0xFF800000> : vector<2x8xf32>
    %55 = vector.multi_reduction <maximumf>, %54, %cst_34 [2] : vector<2x8x8xf32> to vector<2x8xf32>
    %56 = vector.shape_cast %55 : vector<2x8xf32> to vector<2x8x1xf32>
    %57 = vector.broadcast %56 : vector<2x8x1xf32> to vector<2x8x8xf32>
    %58 = arith.subf %54, %57 : vector<2x8x8xf32>
    %59 = math.exp %58 : vector<2x8x8xf32>
    %cst_35 = arith.constant dense<0.000000e+00> : vector<2x8xf32>
    %60 = vector.multi_reduction <add>, %59, %cst_35 [2] : vector<2x8x8xf32> to vector<2x8xf32>
    %61 = vector.shape_cast %60 : vector<2x8xf32> to vector<2x8x1xf32>
    %62 = tpu.reciprocal %61 {approx = true} : vector<2x8x1xf32> -> vector<2x8x1xf32>
    %63 = vector.broadcast %62 : vector<2x8x1xf32> to vector<2x8x8xf32>
    %64 = arith.mulf %59, %63 : vector<2x8x8xf32>
    %65 = vector.extract_strided_slice %36 {offsets = [0, 0, 8], sizes = [2, 8, 8], strides = [1, 1, 1]} : vector<2x8x32xf32> to vector<2x8x8xf32>
    "tpu.trace_start"() <{level = 10 : i32, message = "bqk,bke->bqe"}> : () -> ()
    %cst_36 = arith.constant dense<0.000000e+00> : vector<2x8x8xf32>
    %66 = tpu.matmul %64, %65, %cst_36 {dimension_numbers = #tpu.dot_dimension_numbers<[2], [1], [1], [2], [0, 0, 0, 1, 1, 2], [0], [0]>} : vector<2x8x8xf32>, vector<2x8x8xf32>, vector<2x8x8xf32> -> vector<2x8x8xf32>
    "tpu.trace_stop"() : () -> ()
    %67 = vector.extract_strided_slice %34 {offsets = [0, 0, 16], sizes = [2, 8, 8], strides = [1, 1, 1]} : vector<2x8x32xf32> to vector<2x8x8xf32>
    %68 = vector.extract_strided_slice %35 {offsets = [0, 0, 16], sizes = [2, 8, 8], strides = [1, 1, 1]} : vector<2x8x32xf32> to vector<2x8x8xf32>
    "tpu.trace_start"() <{level = 10 : i32, message = "bqe,bke->bqk"}> : () -> ()
    %cst_37 = arith.constant dense<0.000000e+00> : vector<2x8x8xf32>
    %69 = tpu.matmul %67, %68, %cst_37 {dimension_numbers = #tpu.dot_dimension_numbers<[2], [2], [1], [1], [0, 0, 0, 1, 1, 1], [0], [0]>} : vector<2x8x8xf32>, vector<2x8x8xf32>, vector<2x8x8xf32> -> vector<2x8x8xf32>
    "tpu.trace_stop"() : () -> ()
    %cst_38 = arith.constant dense<0xFF800000> : vector<2x8xf32>
    %70 = vector.multi_reduction <maximumf>, %69, %cst_38 [2] : vector<2x8x8xf32> to vector<2x8xf32>
    %71 = vector.shape_cast %70 : vector<2x8xf32> to vector<2x8x1xf32>
    %72 = vector.broadcast %71 : vector<2x8x1xf32> to vector<2x8x8xf32>
    %73 = arith.subf %69, %72 : vector<2x8x8xf32>
    %74 = math.exp %73 : vector<2x8x8xf32>
    %cst_39 = arith.constant dense<0.000000e+00> : vector<2x8xf32>
    %75 = vector.multi_reduction <add>, %74, %cst_39 [2] : vector<2x8x8xf32> to vector<2x8xf32>
    %76 = vector.shape_cast %75 : vector<2x8xf32> to vector<2x8x1xf32>
    %77 = tpu.reciprocal %76 {approx = true} : vector<2x8x1xf32> -> vector<2x8x1xf32>
    %78 = vector.broadcast %77 : vector<2x8x1xf32> to vector<2x8x8xf32>
    %79 = arith.mulf %74, %78 : vector<2x8x8xf32>
    %80 = vector.extract_strided_slice %36 {offsets = [0, 0, 16], sizes = [2, 8, 8], strides = [1, 1, 1]} : vector<2x8x32xf32> to vector<2x8x8xf32>
    "tpu.trace_start"() <{level = 10 : i32, message = "bqk,bke->bqe"}> : () -> ()
    %cst_40 = arith.constant dense<0.000000e+00> : vector<2x8x8xf32>
    %81 = tpu.matmul %79, %80, %cst_40 {dimension_numbers = #tpu.dot_dimension_numbers<[2], [1], [1], [2], [0, 0, 0, 1, 1, 2], [0], [0]>} : vector<2x8x8xf32>, vector<2x8x8xf32>, vector<2x8x8xf32> -> vector<2x8x8xf32>
    "tpu.trace_stop"() : () -> ()
    %82 = vector.extract_strided_slice %34 {offsets = [0, 0, 24], sizes = [2, 8, 8], strides = [1, 1, 1]} : vector<2x8x32xf32> to vector<2x8x8xf32>
    %83 = vector.extract_strided_slice %35 {offsets = [0, 0, 24], sizes = [2, 8, 8], strides = [1, 1, 1]} : vector<2x8x32xf32> to vector<2x8x8xf32>
    "tpu.trace_start"() <{level = 10 : i32, message = "bqe,bke->bqk"}> : () -> ()
    %cst_41 = arith.constant dense<0.000000e+00> : vector<2x8x8xf32>
    %84 = tpu.matmul %82, %83, %cst_41 {dimension_numbers = #tpu.dot_dimension_numbers<[2], [2], [1], [1], [0, 0, 0, 1, 1, 1], [0], [0]>} : vector<2x8x8xf32>, vector<2x8x8xf32>, vector<2x8x8xf32> -> vector<2x8x8xf32>
    "tpu.trace_stop"() : () -> ()
    %cst_42 = arith.constant dense<0xFF800000> : vector<2x8xf32>
    %85 = vector.multi_reduction <maximumf>, %84, %cst_42 [2] : vector<2x8x8xf32> to vector<2x8xf32>
    %86 = vector.shape_cast %85 : vector<2x8xf32> to vector<2x8x1xf32>
    %87 = vector.broadcast %86 : vector<2x8x1xf32> to vector<2x8x8xf32>
    %88 = arith.subf %84, %87 : vector<2x8x8xf32>
    %89 = math.exp %88 : vector<2x8x8xf32>
    %cst_43 = arith.constant dense<0.000000e+00> : vector<2x8xf32>
    %90 = vector.multi_reduction <add>, %89, %cst_43 [2] : vector<2x8x8xf32> to vector<2x8xf32>
    %91 = vector.shape_cast %90 : vector<2x8xf32> to vector<2x8x1xf32>
    %92 = tpu.reciprocal %91 {approx = true} : vector<2x8x1xf32> -> vector<2x8x1xf32>
    %93 = vector.broadcast %92 : vector<2x8x1xf32> to vector<2x8x8xf32>
    %94 = arith.mulf %89, %93 : vector<2x8x8xf32>
    %95 = vector.extract_strided_slice %36 {offsets = [0, 0, 24], sizes = [2, 8, 8], strides = [1, 1, 1]} : vector<2x8x32xf32> to vector<2x8x8xf32>
    "tpu.trace_start"() <{level = 10 : i32, message = "bqk,bke->bqe"}> : () -> ()
    %cst_44 = arith.constant dense<0.000000e+00> : vector<2x8x8xf32>
    %96 = tpu.matmul %94, %95, %cst_44 {dimension_numbers = #tpu.dot_dimension_numbers<[2], [1], [1], [2], [0, 0, 0, 1, 1, 2], [0], [0]>} : vector<2x8x8xf32>, vector<2x8x8xf32>, vector<2x8x8xf32> -> vector<2x8x8xf32>
    "tpu.trace_stop"() : () -> ()
    %97 = tpu.concatenate %51, %66, %81, %96 in 2 : vector<2x8x8xf32>, vector<2x8x8xf32>, vector<2x8x8xf32>, vector<2x8x8xf32> -> vector<2x8x32xf32>
    %98 = vector.shape_cast %97 : vector<2x8x32xf32> to vector<16x32xf32>
    %c0_45 = arith.constant 0 : index
    %c0_46 = arith.constant 0 : index
    %c0_47 = arith.constant 0 : index
    %99 = vector.load %arg10[%c0_45, %c0_46, %c0_47] : memref<2x32x32xf32, #tpu.memory_space<vmem>>, vector<1x32x32xf32>
    %100 = vector.shape_cast %99 : vector<1x32x32xf32> to vector<32x32xf32>
    %cst_48 = arith.constant dense<0.000000e+00> : vector<16x32xf32>
    %101 = tpu.matmul %98, %100, %cst_48 {dimension_numbers = #tpu.dot_dimension_numbers<[1], [0], [0], [1], [0, 0, 1, 1], [], []>} : vector<16x32xf32>, vector<32x32xf32>, vector<16x32xf32> -> vector<16x32xf32>
    %c0_49 = arith.constant 0 : index
    %c0_50 = arith.constant 0 : index
    %c0_51 = arith.constant 0 : index
    %102 = vector.load %arg11[%c0_49, %c0_50, %c0_51] : memref<2x1x32xf32, #tpu.memory_space<vmem>>, vector<1x1x32xf32>
    %103 = vector.shape_cast %102 : vector<1x1x32xf32> to vector<1x32xf32>
    %104 = vector.broadcast %103 : vector<1x32xf32> to vector<16x32xf32>
    %105 = arith.addf %101, %104 : vector<16x32xf32>
    %106 = arith.addf %12, %105 : vector<16x32xf32>
    %c0_52 = arith.constant 0 : index
    %c0_53 = arith.constant 0 : index
    %c0_54 = arith.constant 0 : index
    %107 = vector.load %arg16[%c0_52, %c0_53, %c0_54] : memref<2x1x32xf32, #tpu.memory_space<vmem>>, vector<1x1x32xf32>
    %108 = vector.shape_cast %107 : vector<1x1x32xf32> to vector<1x32xf32>
    %c0_55 = arith.constant 0 : index
    %c0_56 = arith.constant 0 : index
    %c0_57 = arith.constant 0 : index
    %109 = vector.load %arg17[%c0_55, %c0_56, %c0_57] : memref<2x1x32xf32, #tpu.memory_space<vmem>>, vector<1x1x32xf32>
    %110 = vector.shape_cast %109 : vector<1x1x32xf32> to vector<1x32xf32>
    %cst_58 = arith.constant dense<0.000000e+00> : vector<16xf32>
    %111 = vector.multi_reduction <add>, %106, %cst_58 [1] : vector<16x32xf32> to vector<16xf32>
    %112 = vector.shape_cast %111 : vector<16xf32> to vector<16x1xf32>
    %cst_59 = arith.constant 3.200000e+01 : f32
    %113 = vector.broadcast %cst_59 : f32 to vector<16x1xf32>
    %114 = arith.divf %112, %113 : vector<16x1xf32>
    %115 = vector.broadcast %114 : vector<16x1xf32> to vector<16x32xf32>
    %116 = arith.subf %106, %115 : vector<16x32xf32>
    %117 = arith.mulf %116, %116 : vector<16x32xf32>
    %cst_60 = arith.constant dense<0.000000e+00> : vector<16xf32>
    %118 = vector.multi_reduction <add>, %117, %cst_60 [1] : vector<16x32xf32> to vector<16xf32>
    %119 = vector.shape_cast %118 : vector<16xf32> to vector<16x1xf32>
    %cst_61 = arith.constant 3.200000e+01 : f32
    %120 = vector.broadcast %cst_61 : f32 to vector<16x1xf32>
    %121 = arith.divf %119, %120 : vector<16x1xf32>
    %122 = vector.broadcast %114 : vector<16x1xf32> to vector<16x32xf32>
    %123 = arith.subf %106, %122 : vector<16x32xf32>
    %cst_62 = arith.constant 9.99999974E-6 : f32
    %124 = vector.broadcast %cst_62 : f32 to vector<16x1xf32>
    %125 = arith.addf %121, %124 : vector<16x1xf32>
    %126 = math.rsqrt %125 : vector<16x1xf32>
    %127 = vector.broadcast %126 : vector<16x1xf32> to vector<16x32xf32>
    %128 = arith.mulf %123, %127 : vector<16x32xf32>
    %129 = vector.broadcast %108 : vector<1x32xf32> to vector<16x32xf32>
    %130 = arith.mulf %128, %129 : vector<16x32xf32>
    %131 = vector.broadcast %110 : vector<1x32xf32> to vector<16x32xf32>
    %132 = arith.addf %130, %131 : vector<16x32xf32>
    %c0_63 = arith.constant 0 : index
    %c0_64 = arith.constant 0 : index
    %c0_65 = arith.constant 0 : index
    %133 = vector.load %arg12[%c0_63, %c0_64, %c0_65] : memref<2x32x32xf32, #tpu.memory_space<vmem>>, vector<1x32x32xf32>
    %134 = vector.shape_cast %133 : vector<1x32x32xf32> to vector<32x32xf32>
    %cst_66 = arith.constant dense<0.000000e+00> : vector<16x32xf32>
    %135 = tpu.matmul %132, %134, %cst_66 {dimension_numbers = #tpu.dot_dimension_numbers<[1], [0], [0], [1], [0, 0, 1, 1], [], []>} : vector<16x32xf32>, vector<32x32xf32>, vector<16x32xf32> -> vector<16x32xf32>
    %c0_67 = arith.constant 0 : index
    %c0_68 = arith.constant 0 : index
    %c0_69 = arith.constant 0 : index
    %136 = vector.load %arg13[%c0_67, %c0_68, %c0_69] : memref<2x1x32xf32, #tpu.memory_space<vmem>>, vector<1x1x32xf32>
    %137 = vector.shape_cast %136 : vector<1x1x32xf32> to vector<1x32xf32>
    %138 = vector.broadcast %137 : vector<1x32xf32> to vector<16x32xf32>
    %139 = arith.addf %135, %138 : vector<16x32xf32>
    %cst_70 = arith.constant 0.000000e+00 : f32
    %140 = vector.broadcast %cst_70 : f32 to vector<16x32xf32>
    %141 = arith.maximumf %139, %140 : vector<16x32xf32>
    %c0_71 = arith.constant 0 : index
    %c0_72 = arith.constant 0 : index
    %c0_73 = arith.constant 0 : index
    %142 = vector.load %arg14[%c0_71, %c0_72, %c0_73] : memref<2x32x32xf32, #tpu.memory_space<vmem>>, vector<1x32x32xf32>
    %143 = vector.shape_cast %142 : vector<1x32x32xf32> to vector<32x32xf32>
    %cst_74 = arith.constant dense<0.000000e+00> : vector<16x32xf32>
    %144 = tpu.matmul %141, %143, %cst_74 {dimension_numbers = #tpu.dot_dimension_numbers<[1], [0], [0], [1], [0, 0, 1, 1], [], []>} : vector<16x32xf32>, vector<32x32xf32>, vector<16x32xf32> -> vector<16x32xf32>
    %c0_75 = arith.constant 0 : index
    %c0_76 = arith.constant 0 : index
    %c0_77 = arith.constant 0 : index
    %145 = vector.load %arg15[%c0_75, %c0_76, %c0_77] : memref<2x1x32xf32, #tpu.memory_space<vmem>>, vector<1x1x32xf32>
    %146 = vector.shape_cast %145 : vector<1x1x32xf32> to vector<1x32xf32>
    %147 = vector.broadcast %146 : vector<1x32xf32> to vector<16x32xf32>
    %148 = arith.addf %144, %147 : vector<16x32xf32>
    %149 = arith.addf %132, %148 : vector<16x32xf32>
    %c0_78 = arith.constant 0 : index
    %c0_79 = arith.constant 0 : index
    %c0_80 = arith.constant 0 : index
    %150 = vector.load %arg18[%c0_78, %c0_79, %c0_80] : memref<2x1x32xf32, #tpu.memory_space<vmem>>, vector<1x1x32xf32>
    %151 = vector.shape_cast %150 : vector<1x1x32xf32> to vector<1x32xf32>
    %c0_81 = arith.constant 0 : index
    %c0_82 = arith.constant 0 : index
    %c0_83 = arith.constant 0 : index
    %152 = vector.load %arg19[%c0_81, %c0_82, %c0_83] : memref<2x1x32xf32, #tpu.memory_space<vmem>>, vector<1x1x32xf32>
    %153 = vector.shape_cast %152 : vector<1x1x32xf32> to vector<1x32xf32>
    %cst_84 = arith.constant dense<0.000000e+00> : vector<16xf32>
    %154 = vector.multi_reduction <add>, %149, %cst_84 [1] : vector<16x32xf32> to vector<16xf32>
    %155 = vector.shape_cast %154 : vector<16xf32> to vector<16x1xf32>
    %cst_85 = arith.constant 3.200000e+01 : f32
    %156 = vector.broadcast %cst_85 : f32 to vector<16x1xf32>
    %157 = arith.divf %155, %156 : vector<16x1xf32>
    %158 = vector.broadcast %157 : vector<16x1xf32> to vector<16x32xf32>
    %159 = arith.subf %149, %158 : vector<16x32xf32>
    %160 = arith.mulf %159, %159 : vector<16x32xf32>
    %cst_86 = arith.constant dense<0.000000e+00> : vector<16xf32>
    %161 = vector.multi_reduction <add>, %160, %cst_86 [1] : vector<16x32xf32> to vector<16xf32>
    %162 = vector.shape_cast %161 : vector<16xf32> to vector<16x1xf32>
    %cst_87 = arith.constant 3.200000e+01 : f32
    %163 = vector.broadcast %cst_87 : f32 to vector<16x1xf32>
    %164 = arith.divf %162, %163 : vector<16x1xf32>
    %165 = vector.broadcast %157 : vector<16x1xf32> to vector<16x32xf32>
    %166 = arith.subf %149, %165 : vector<16x32xf32>
    %cst_88 = arith.constant 9.99999974E-6 : f32
    %167 = vector.broadcast %cst_88 : f32 to vector<16x1xf32>
    %168 = arith.addf %164, %167 : vector<16x1xf32>
    %169 = math.rsqrt %168 : vector<16x1xf32>
    %170 = vector.broadcast %169 : vector<16x1xf32> to vector<16x32xf32>
    %171 = arith.mulf %166, %170 : vector<16x32xf32>
    %172 = vector.broadcast %151 : vector<1x32xf32> to vector<16x32xf32>
    %173 = arith.mulf %171, %172 : vector<16x32xf32>
    %174 = vector.broadcast %153 : vector<1x32xf32> to vector<16x32xf32>
    %175 = arith.addf %173, %174 : vector<16x32xf32>
    %c1 = arith.constant 1 : index
    %c0_89 = arith.constant 0 : index
    %c0_90 = arith.constant 0 : index
    %176 = vector.load %arg4[%c1, %c0_89, %c0_90] : memref<2x32x32xf32, #tpu.memory_space<vmem>>, vector<1x32x32xf32>
    %177 = vector.shape_cast %176 : vector<1x32x32xf32> to vector<32x32xf32>
    %cst_91 = arith.constant dense<0.000000e+00> : vector<16x32xf32>
    %178 = tpu.matmul %175, %177, %cst_91 {dimension_numbers = #tpu.dot_dimension_numbers<[1], [0], [0], [1], [0, 0, 1, 1], [], []>} : vector<16x32xf32>, vector<32x32xf32>, vector<16x32xf32> -> vector<16x32xf32>
    %c1_92 = arith.constant 1 : index
    %c0_93 = arith.constant 0 : index
    %c0_94 = arith.constant 0 : index
    %179 = vector.load %arg5[%c1_92, %c0_93, %c0_94] : memref<2x1x32xf32, #tpu.memory_space<vmem>>, vector<1x1x32xf32>
    %180 = vector.shape_cast %179 : vector<1x1x32xf32> to vector<1x32xf32>
    %181 = vector.broadcast %180 : vector<1x32xf32> to vector<16x32xf32>
    %182 = arith.addf %178, %181 : vector<16x32xf32>
    %c1_95 = arith.constant 1 : index
    %c0_96 = arith.constant 0 : index
    %c0_97 = arith.constant 0 : index
    %183 = vector.load %arg6[%c1_95, %c0_96, %c0_97] : memref<2x32x32xf32, #tpu.memory_space<vmem>>, vector<1x32x32xf32>
    %184 = vector.shape_cast %183 : vector<1x32x32xf32> to vector<32x32xf32>
    %cst_98 = arith.constant dense<0.000000e+00> : vector<16x32xf32>
    %185 = tpu.matmul %175, %184, %cst_98 {dimension_numbers = #tpu.dot_dimension_numbers<[1], [0], [0], [1], [0, 0, 1, 1], [], []>} : vector<16x32xf32>, vector<32x32xf32>, vector<16x32xf32> -> vector<16x32xf32>
    %c1_99 = arith.constant 1 : index
    %c0_100 = arith.constant 0 : index
    %c0_101 = arith.constant 0 : index
    %186 = vector.load %arg7[%c1_99, %c0_100, %c0_101] : memref<2x1x32xf32, #tpu.memory_space<vmem>>, vector<1x1x32xf32>
    %187 = vector.shape_cast %186 : vector<1x1x32xf32> to vector<1x32xf32>
    %188 = vector.broadcast %187 : vector<1x32xf32> to vector<16x32xf32>
    %189 = arith.addf %185, %188 : vector<16x32xf32>
    %c1_102 = arith.constant 1 : index
    %c0_103 = arith.constant 0 : index
    %c0_104 = arith.constant 0 : index
    %190 = vector.load %arg8[%c1_102, %c0_103, %c0_104] : memref<2x32x32xf32, #tpu.memory_space<vmem>>, vector<1x32x32xf32>
    %191 = vector.shape_cast %190 : vector<1x32x32xf32> to vector<32x32xf32>
    %cst_105 = arith.constant dense<0.000000e+00> : vector<16x32xf32>
    %192 = tpu.matmul %175, %191, %cst_105 {dimension_numbers = #tpu.dot_dimension_numbers<[1], [0], [0], [1], [0, 0, 1, 1], [], []>} : vector<16x32xf32>, vector<32x32xf32>, vector<16x32xf32> -> vector<16x32xf32>
    %c1_106 = arith.constant 1 : index
    %c0_107 = arith.constant 0 : index
    %c0_108 = arith.constant 0 : index
    %193 = vector.load %arg9[%c1_106, %c0_107, %c0_108] : memref<2x1x32xf32, #tpu.memory_space<vmem>>, vector<1x1x32xf32>
    %194 = vector.shape_cast %193 : vector<1x1x32xf32> to vector<1x32xf32>
    %195 = vector.broadcast %194 : vector<1x32xf32> to vector<16x32xf32>
    %196 = arith.addf %192, %195 : vector<16x32xf32>
    %197 = vector.shape_cast %182 : vector<16x32xf32> to vector<2x8x32xf32>
    %198 = vector.shape_cast %189 : vector<16x32xf32> to vector<2x8x32xf32>
    %199 = vector.shape_cast %196 : vector<16x32xf32> to vector<2x8x32xf32>
    %200 = vector.extract_strided_slice %197 {offsets = [0, 0, 0], sizes = [2, 8, 8], strides = [1, 1, 1]} : vector<2x8x32xf32> to vector<2x8x8xf32>
    %201 = vector.extract_strided_slice %198 {offsets = [0, 0, 0], sizes = [2, 8, 8], strides = [1, 1, 1]} : vector<2x8x32xf32> to vector<2x8x8xf32>
    "tpu.trace_start"() <{level = 10 : i32, message = "bqe,bke->bqk"}> : () -> ()
    %cst_109 = arith.constant dense<0.000000e+00> : vector<2x8x8xf32>
    %202 = tpu.matmul %200, %201, %cst_109 {dimension_numbers = #tpu.dot_dimension_numbers<[2], [2], [1], [1], [0, 0, 0, 1, 1, 1], [0], [0]>} : vector<2x8x8xf32>, vector<2x8x8xf32>, vector<2x8x8xf32> -> vector<2x8x8xf32>
    "tpu.trace_stop"() : () -> ()
    %cst_110 = arith.constant dense<0xFF800000> : vector<2x8xf32>
    %203 = vector.multi_reduction <maximumf>, %202, %cst_110 [2] : vector<2x8x8xf32> to vector<2x8xf32>
    %204 = vector.shape_cast %203 : vector<2x8xf32> to vector<2x8x1xf32>
    %205 = vector.broadcast %204 : vector<2x8x1xf32> to vector<2x8x8xf32>
    %206 = arith.subf %202, %205 : vector<2x8x8xf32>
    %207 = math.exp %206 : vector<2x8x8xf32>
    %cst_111 = arith.constant dense<0.000000e+00> : vector<2x8xf32>
    %208 = vector.multi_reduction <add>, %207, %cst_111 [2] : vector<2x8x8xf32> to vector<2x8xf32>
    %209 = vector.shape_cast %208 : vector<2x8xf32> to vector<2x8x1xf32>
    %210 = tpu.reciprocal %209 {approx = true} : vector<2x8x1xf32> -> vector<2x8x1xf32>
    %211 = vector.broadcast %210 : vector<2x8x1xf32> to vector<2x8x8xf32>
    %212 = arith.mulf %207, %211 : vector<2x8x8xf32>
    %213 = vector.extract_strided_slice %199 {offsets = [0, 0, 0], sizes = [2, 8, 8], strides = [1, 1, 1]} : vector<2x8x32xf32> to vector<2x8x8xf32>
    "tpu.trace_start"() <{level = 10 : i32, message = "bqk,bke->bqe"}> : () -> ()
    %cst_112 = arith.constant dense<0.000000e+00> : vector<2x8x8xf32>
    %214 = tpu.matmul %212, %213, %cst_112 {dimension_numbers = #tpu.dot_dimension_numbers<[2], [1], [1], [2], [0, 0, 0, 1, 1, 2], [0], [0]>} : vector<2x8x8xf32>, vector<2x8x8xf32>, vector<2x8x8xf32> -> vector<2x8x8xf32>
    "tpu.trace_stop"() : () -> ()
    %215 = vector.extract_strided_slice %197 {offsets = [0, 0, 8], sizes = [2, 8, 8], strides = [1, 1, 1]} : vector<2x8x32xf32> to vector<2x8x8xf32>
    %216 = vector.extract_strided_slice %198 {offsets = [0, 0, 8], sizes = [2, 8, 8], strides = [1, 1, 1]} : vector<2x8x32xf32> to vector<2x8x8xf32>
    "tpu.trace_start"() <{level = 10 : i32, message = "bqe,bke->bqk"}> : () -> ()
    %cst_113 = arith.constant dense<0.000000e+00> : vector<2x8x8xf32>
    %217 = tpu.matmul %215, %216, %cst_113 {dimension_numbers = #tpu.dot_dimension_numbers<[2], [2], [1], [1], [0, 0, 0, 1, 1, 1], [0], [0]>} : vector<2x8x8xf32>, vector<2x8x8xf32>, vector<2x8x8xf32> -> vector<2x8x8xf32>
    "tpu.trace_stop"() : () -> ()
    %cst_114 = arith.constant dense<0xFF800000> : vector<2x8xf32>
    %218 = vector.multi_reduction <maximumf>, %217, %cst_114 [2] : vector<2x8x8xf32> to vector<2x8xf32>
    %219 = vector.shape_cast %218 : vector<2x8xf32> to vector<2x8x1xf32>
    %220 = vector.broadcast %219 : vector<2x8x1xf32> to vector<2x8x8xf32>
    %221 = arith.subf %217, %220 : vector<2x8x8xf32>
    %222 = math.exp %221 : vector<2x8x8xf32>
    %cst_115 = arith.constant dense<0.000000e+00> : vector<2x8xf32>
    %223 = vector.multi_reduction <add>, %222, %cst_115 [2] : vector<2x8x8xf32> to vector<2x8xf32>
    %224 = vector.shape_cast %223 : vector<2x8xf32> to vector<2x8x1xf32>
    %225 = tpu.reciprocal %224 {approx = true} : vector<2x8x1xf32> -> vector<2x8x1xf32>
    %226 = vector.broadcast %225 : vector<2x8x1xf32> to vector<2x8x8xf32>
    %227 = arith.mulf %222, %226 : vector<2x8x8xf32>
    %228 = vector.extract_strided_slice %199 {offsets = [0, 0, 8], sizes = [2, 8, 8], strides = [1, 1, 1]} : vector<2x8x32xf32> to vector<2x8x8xf32>
    "tpu.trace_start"() <{level = 10 : i32, message = "bqk,bke->bqe"}> : () -> ()
    %cst_116 = arith.constant dense<0.000000e+00> : vector<2x8x8xf32>
    %229 = tpu.matmul %227, %228, %cst_116 {dimension_numbers = #tpu.dot_dimension_numbers<[2], [1], [1], [2], [0, 0, 0, 1, 1, 2], [0], [0]>} : vector<2x8x8xf32>, vector<2x8x8xf32>, vector<2x8x8xf32> -> vector<2x8x8xf32>
    "tpu.trace_stop"() : () -> ()
    %230 = vector.extract_strided_slice %197 {offsets = [0, 0, 16], sizes = [2, 8, 8], strides = [1, 1, 1]} : vector<2x8x32xf32> to vector<2x8x8xf32>
    %231 = vector.extract_strided_slice %198 {offsets = [0, 0, 16], sizes = [2, 8, 8], strides = [1, 1, 1]} : vector<2x8x32xf32> to vector<2x8x8xf32>
    "tpu.trace_start"() <{level = 10 : i32, message = "bqe,bke->bqk"}> : () -> ()
    %cst_117 = arith.constant dense<0.000000e+00> : vector<2x8x8xf32>
    %232 = tpu.matmul %230, %231, %cst_117 {dimension_numbers = #tpu.dot_dimension_numbers<[2], [2], [1], [1], [0, 0, 0, 1, 1, 1], [0], [0]>} : vector<2x8x8xf32>, vector<2x8x8xf32>, vector<2x8x8xf32> -> vector<2x8x8xf32>
    "tpu.trace_stop"() : () -> ()
    %cst_118 = arith.constant dense<0xFF800000> : vector<2x8xf32>
    %233 = vector.multi_reduction <maximumf>, %232, %cst_118 [2] : vector<2x8x8xf32> to vector<2x8xf32>
    %234 = vector.shape_cast %233 : vector<2x8xf32> to vector<2x8x1xf32>
    %235 = vector.broadcast %234 : vector<2x8x1xf32> to vector<2x8x8xf32>
    %236 = arith.subf %232, %235 : vector<2x8x8xf32>
    %237 = math.exp %236 : vector<2x8x8xf32>
    %cst_119 = arith.constant dense<0.000000e+00> : vector<2x8xf32>
    %238 = vector.multi_reduction <add>, %237, %cst_119 [2] : vector<2x8x8xf32> to vector<2x8xf32>
    %239 = vector.shape_cast %238 : vector<2x8xf32> to vector<2x8x1xf32>
    %240 = tpu.reciprocal %239 {approx = true} : vector<2x8x1xf32> -> vector<2x8x1xf32>
    %241 = vector.broadcast %240 : vector<2x8x1xf32> to vector<2x8x8xf32>
    %242 = arith.mulf %237, %241 : vector<2x8x8xf32>
    %243 = vector.extract_strided_slice %199 {offsets = [0, 0, 16], sizes = [2, 8, 8], strides = [1, 1, 1]} : vector<2x8x32xf32> to vector<2x8x8xf32>
    "tpu.trace_start"() <{level = 10 : i32, message = "bqk,bke->bqe"}> : () -> ()
    %cst_120 = arith.constant dense<0.000000e+00> : vector<2x8x8xf32>
    %244 = tpu.matmul %242, %243, %cst_120 {dimension_numbers = #tpu.dot_dimension_numbers<[2], [1], [1], [2], [0, 0, 0, 1, 1, 2], [0], [0]>} : vector<2x8x8xf32>, vector<2x8x8xf32>, vector<2x8x8xf32> -> vector<2x8x8xf32>
    "tpu.trace_stop"() : () -> ()
    %245 = vector.extract_strided_slice %197 {offsets = [0, 0, 24], sizes = [2, 8, 8], strides = [1, 1, 1]} : vector<2x8x32xf32> to vector<2x8x8xf32>
    %246 = vector.extract_strided_slice %198 {offsets = [0, 0, 24], sizes = [2, 8, 8], strides = [1, 1, 1]} : vector<2x8x32xf32> to vector<2x8x8xf32>
    "tpu.trace_start"() <{level = 10 : i32, message = "bqe,bke->bqk"}> : () -> ()
    %cst_121 = arith.constant dense<0.000000e+00> : vector<2x8x8xf32>
    %247 = tpu.matmul %245, %246, %cst_121 {dimension_numbers = #tpu.dot_dimension_numbers<[2], [2], [1], [1], [0, 0, 0, 1, 1, 1], [0], [0]>} : vector<2x8x8xf32>, vector<2x8x8xf32>, vector<2x8x8xf32> -> vector<2x8x8xf32>
    "tpu.trace_stop"() : () -> ()
    %cst_122 = arith.constant dense<0xFF800000> : vector<2x8xf32>
    %248 = vector.multi_reduction <maximumf>, %247, %cst_122 [2] : vector<2x8x8xf32> to vector<2x8xf32>
    %249 = vector.shape_cast %248 : vector<2x8xf32> to vector<2x8x1xf32>
    %250 = vector.broadcast %249 : vector<2x8x1xf32> to vector<2x8x8xf32>
    %251 = arith.subf %247, %250 : vector<2x8x8xf32>
    %252 = math.exp %251 : vector<2x8x8xf32>
    %cst_123 = arith.constant dense<0.000000e+00> : vector<2x8xf32>
    %253 = vector.multi_reduction <add>, %252, %cst_123 [2] : vector<2x8x8xf32> to vector<2x8xf32>
    %254 = vector.shape_cast %253 : vector<2x8xf32> to vector<2x8x1xf32>
    %255 = tpu.reciprocal %254 {approx = true} : vector<2x8x1xf32> -> vector<2x8x1xf32>
    %256 = vector.broadcast %255 : vector<2x8x1xf32> to vector<2x8x8xf32>
    %257 = arith.mulf %252, %256 : vector<2x8x8xf32>
    %258 = vector.extract_strided_slice %199 {offsets = [0, 0, 24], sizes = [2, 8, 8], strides = [1, 1, 1]} : vector<2x8x32xf32> to vector<2x8x8xf32>
    "tpu.trace_start"() <{level = 10 : i32, message = "bqk,bke->bqe"}> : () -> ()
    %cst_124 = arith.constant dense<0.000000e+00> : vector<2x8x8xf32>
    %259 = tpu.matmul %257, %258, %cst_124 {dimension_numbers = #tpu.dot_dimension_numbers<[2], [1], [1], [2], [0, 0, 0, 1, 1, 2], [0], [0]>} : vector<2x8x8xf32>, vector<2x8x8xf32>, vector<2x8x8xf32> -> vector<2x8x8xf32>
    "tpu.trace_stop"() : () -> ()
    %260 = tpu.concatenate %214, %229, %244, %259 in 2 : vector<2x8x8xf32>, vector<2x8x8xf32>, vector<2x8x8xf32>, vector<2x8x8xf32> -> vector<2x8x32xf32>
    %261 = vector.shape_cast %260 : vector<2x8x32xf32> to vector<16x32xf32>
    %c1_125 = arith.constant 1 : index
    %c0_126 = arith.constant 0 : index
    %c0_127 = arith.constant 0 : index
    %262 = vector.load %arg10[%c1_125, %c0_126, %c0_127] : memref<2x32x32xf32, #tpu.memory_space<vmem>>, vector<1x32x32xf32>
    %263 = vector.shape_cast %262 : vector<1x32x32xf32> to vector<32x32xf32>
    %cst_128 = arith.constant dense<0.000000e+00> : vector<16x32xf32>
    %264 = tpu.matmul %261, %263, %cst_128 {dimension_numbers = #tpu.dot_dimension_numbers<[1], [0], [0], [1], [0, 0, 1, 1], [], []>} : vector<16x32xf32>, vector<32x32xf32>, vector<16x32xf32> -> vector<16x32xf32>
    %c1_129 = arith.constant 1 : index
    %c0_130 = arith.constant 0 : index
    %c0_131 = arith.constant 0 : index
    %265 = vector.load %arg11[%c1_129, %c0_130, %c0_131] : memref<2x1x32xf32, #tpu.memory_space<vmem>>, vector<1x1x32xf32>
    %266 = vector.shape_cast %265 : vector<1x1x32xf32> to vector<1x32xf32>
    %267 = vector.broadcast %266 : vector<1x32xf32> to vector<16x32xf32>
    %268 = arith.addf %264, %267 : vector<16x32xf32>
    %269 = arith.addf %175, %268 : vector<16x32xf32>
    %c1_132 = arith.constant 1 : index
    %c0_133 = arith.constant 0 : index
    %c0_134 = arith.constant 0 : index
    %270 = vector.load %arg16[%c1_132, %c0_133, %c0_134] : memref<2x1x32xf32, #tpu.memory_space<vmem>>, vector<1x1x32xf32>
    %271 = vector.shape_cast %270 : vector<1x1x32xf32> to vector<1x32xf32>
    %c1_135 = arith.constant 1 : index
    %c0_136 = arith.constant 0 : index
    %c0_137 = arith.constant 0 : index
    %272 = vector.load %arg17[%c1_135, %c0_136, %c0_137] : memref<2x1x32xf32, #tpu.memory_space<vmem>>, vector<1x1x32xf32>
    %273 = vector.shape_cast %272 : vector<1x1x32xf32> to vector<1x32xf32>
    %cst_138 = arith.constant dense<0.000000e+00> : vector<16xf32>
    %274 = vector.multi_reduction <add>, %269, %cst_138 [1] : vector<16x32xf32> to vector<16xf32>
    %275 = vector.shape_cast %274 : vector<16xf32> to vector<16x1xf32>
    %cst_139 = arith.constant 3.200000e+01 : f32
    %276 = vector.broadcast %cst_139 : f32 to vector<16x1xf32>
    %277 = arith.divf %275, %276 : vector<16x1xf32>
    %278 = vector.broadcast %277 : vector<16x1xf32> to vector<16x32xf32>
    %279 = arith.subf %269, %278 : vector<16x32xf32>
    %280 = arith.mulf %279, %279 : vector<16x32xf32>
    %cst_140 = arith.constant dense<0.000000e+00> : vector<16xf32>
    %281 = vector.multi_reduction <add>, %280, %cst_140 [1] : vector<16x32xf32> to vector<16xf32>
    %282 = vector.shape_cast %281 : vector<16xf32> to vector<16x1xf32>
    %cst_141 = arith.constant 3.200000e+01 : f32
    %283 = vector.broadcast %cst_141 : f32 to vector<16x1xf32>
    %284 = arith.divf %282, %283 : vector<16x1xf32>
    %285 = vector.broadcast %277 : vector<16x1xf32> to vector<16x32xf32>
    %286 = arith.subf %269, %285 : vector<16x32xf32>
    %cst_142 = arith.constant 9.99999974E-6 : f32
    %287 = vector.broadcast %cst_142 : f32 to vector<16x1xf32>
    %288 = arith.addf %284, %287 : vector<16x1xf32>
    %289 = math.rsqrt %288 : vector<16x1xf32>
    %290 = vector.broadcast %289 : vector<16x1xf32> to vector<16x32xf32>
    %291 = arith.mulf %286, %290 : vector<16x32xf32>
    %292 = vector.broadcast %271 : vector<1x32xf32> to vector<16x32xf32>
    %293 = arith.mulf %291, %292 : vector<16x32xf32>
    %294 = vector.broadcast %273 : vector<1x32xf32> to vector<16x32xf32>
    %295 = arith.addf %293, %294 : vector<16x32xf32>
    %c1_143 = arith.constant 1 : index
    %c0_144 = arith.constant 0 : index
    %c0_145 = arith.constant 0 : index
    %296 = vector.load %arg12[%c1_143, %c0_144, %c0_145] : memref<2x32x32xf32, #tpu.memory_space<vmem>>, vector<1x32x32xf32>
    %297 = vector.shape_cast %296 : vector<1x32x32xf32> to vector<32x32xf32>
    %cst_146 = arith.constant dense<0.000000e+00> : vector<16x32xf32>
    %298 = tpu.matmul %295, %297, %cst_146 {dimension_numbers = #tpu.dot_dimension_numbers<[1], [0], [0], [1], [0, 0, 1, 1], [], []>} : vector<16x32xf32>, vector<32x32xf32>, vector<16x32xf32> -> vector<16x32xf32>
    %c1_147 = arith.constant 1 : index
    %c0_148 = arith.constant 0 : index
    %c0_149 = arith.constant 0 : index
    %299 = vector.load %arg13[%c1_147, %c0_148, %c0_149] : memref<2x1x32xf32, #tpu.memory_space<vmem>>, vector<1x1x32xf32>
    %300 = vector.shape_cast %299 : vector<1x1x32xf32> to vector<1x32xf32>
    %301 = vector.broadcast %300 : vector<1x32xf32> to vector<16x32xf32>
    %302 = arith.addf %298, %301 : vector<16x32xf32>
    %cst_150 = arith.constant 0.000000e+00 : f32
    %303 = vector.broadcast %cst_150 : f32 to vector<16x32xf32>
    %304 = arith.maximumf %302, %303 : vector<16x32xf32>
    %c1_151 = arith.constant 1 : index
    %c0_152 = arith.constant 0 : index
    %c0_153 = arith.constant 0 : index
    %305 = vector.load %arg14[%c1_151, %c0_152, %c0_153] : memref<2x32x32xf32, #tpu.memory_space<vmem>>, vector<1x32x32xf32>
    %306 = vector.shape_cast %305 : vector<1x32x32xf32> to vector<32x32xf32>
    %cst_154 = arith.constant dense<0.000000e+00> : vector<16x32xf32>
    %307 = tpu.matmul %304, %306, %cst_154 {dimension_numbers = #tpu.dot_dimension_numbers<[1], [0], [0], [1], [0, 0, 1, 1], [], []>} : vector<16x32xf32>, vector<32x32xf32>, vector<16x32xf32> -> vector<16x32xf32>
    %c1_155 = arith.constant 1 : index
    %c0_156 = arith.constant 0 : index
    %c0_157 = arith.constant 0 : index
    %308 = vector.load %arg15[%c1_155, %c0_156, %c0_157] : memref<2x1x32xf32, #tpu.memory_space<vmem>>, vector<1x1x32xf32>
    %309 = vector.shape_cast %308 : vector<1x1x32xf32> to vector<1x32xf32>
    %310 = vector.broadcast %309 : vector<1x32xf32> to vector<16x32xf32>
    %311 = arith.addf %307, %310 : vector<16x32xf32>
    %312 = arith.addf %295, %311 : vector<16x32xf32>
    %c1_158 = arith.constant 1 : index
    %c0_159 = arith.constant 0 : index
    %c0_160 = arith.constant 0 : index
    %313 = vector.load %arg18[%c1_158, %c0_159, %c0_160] : memref<2x1x32xf32, #tpu.memory_space<vmem>>, vector<1x1x32xf32>
    %314 = vector.shape_cast %313 : vector<1x1x32xf32> to vector<1x32xf32>
    %c1_161 = arith.constant 1 : index
    %c0_162 = arith.constant 0 : index
    %c0_163 = arith.constant 0 : index
    %315 = vector.load %arg19[%c1_161, %c0_162, %c0_163] : memref<2x1x32xf32, #tpu.memory_space<vmem>>, vector<1x1x32xf32>
    %316 = vector.shape_cast %315 : vector<1x1x32xf32> to vector<1x32xf32>
    %cst_164 = arith.constant dense<0.000000e+00> : vector<16xf32>
    %317 = vector.multi_reduction <add>, %312, %cst_164 [1] : vector<16x32xf32> to vector<16xf32>
    %318 = vector.shape_cast %317 : vector<16xf32> to vector<16x1xf32>
    %cst_165 = arith.constant 3.200000e+01 : f32
    %319 = vector.broadcast %cst_165 : f32 to vector<16x1xf32>
    %320 = arith.divf %318, %319 : vector<16x1xf32>
    %321 = vector.broadcast %320 : vector<16x1xf32> to vector<16x32xf32>
    %322 = arith.subf %312, %321 : vector<16x32xf32>
    %323 = arith.mulf %322, %322 : vector<16x32xf32>
    %cst_166 = arith.constant dense<0.000000e+00> : vector<16xf32>
    %324 = vector.multi_reduction <add>, %323, %cst_166 [1] : vector<16x32xf32> to vector<16xf32>
    %325 = vector.shape_cast %324 : vector<16xf32> to vector<16x1xf32>
    %cst_167 = arith.constant 3.200000e+01 : f32
    %326 = vector.broadcast %cst_167 : f32 to vector<16x1xf32>
    %327 = arith.divf %325, %326 : vector<16x1xf32>
    %328 = vector.broadcast %320 : vector<16x1xf32> to vector<16x32xf32>
    %329 = arith.subf %312, %328 : vector<16x32xf32>
    %cst_168 = arith.constant 9.99999974E-6 : f32
    %330 = vector.broadcast %cst_168 : f32 to vector<16x1xf32>
    %331 = arith.addf %327, %330 : vector<16x1xf32>
    %332 = math.rsqrt %331 : vector<16x1xf32>
    %333 = vector.broadcast %332 : vector<16x1xf32> to vector<16x32xf32>
    %334 = arith.mulf %329, %333 : vector<16x32xf32>
    %335 = vector.broadcast %314 : vector<1x32xf32> to vector<16x32xf32>
    %336 = arith.mulf %334, %335 : vector<16x32xf32>
    %337 = vector.broadcast %316 : vector<1x32xf32> to vector<16x32xf32>
    %338 = arith.addf %336, %337 : vector<16x32xf32>
    %339 = vector.shape_cast %338 : vector<16x32xf32> to vector<2x8x32xf32>
    %cst_169 = arith.constant dense<0.000000e+00> : vector<2x32xf32>
    %340 = vector.multi_reduction <add>, %339, %cst_169 [1] : vector<2x8x32xf32> to vector<2x32xf32>
    %cst_170 = arith.constant 8.000000e+00 : f32
    %341 = vector.broadcast %cst_170 : f32 to vector<2x32xf32>
    %342 = arith.divf %340, %341 : vector<2x32xf32>
    %c0_171 = arith.constant 0 : index
    %c0_172 = arith.constant 0 : index
    %343 = vector.load %arg20[%c0_171, %c0_172] : memref<32x1xf32, #tpu.memory_space<vmem>>, vector<32x1xf32>
    %cst_173 = arith.constant dense<0.000000e+00> : vector<2x1xf32>
    %344 = tpu.matmul %342, %343, %cst_173 {dimension_numbers = #tpu.dot_dimension_numbers<[1], [0], [0], [1], [0, 0, 1, 1], [], []>} : vector<2x32xf32>, vector<32x1xf32>, vector<2x1xf32> -> vector<2x1xf32>
    %c0_174 = arith.constant 0 : index
    %c0_175 = arith.constant 0 : index
    %345 = vector.load %arg21[%c0_174, %c0_175] : memref<1x1xf32, #tpu.memory_space<vmem>>, vector<1x1xf32>
    %346 = vector.broadcast %345 : vector<1x1xf32> to vector<2x1xf32>
    %347 = arith.addf %344, %346 : vector<2x1xf32>
    %c0_176 = arith.constant 0 : index
    %c0_177 = arith.constant 0 : index
    %348 = vector.load %arg22[%c0_176, %c0_177] : memref<2x1xf32, #tpu.memory_space<vmem>>, vector<2x1xf32>
    tpu.vector_store %arg22[%c0_176, %c0_177], %347 {strides = array<i32>} : memref<2x1xf32, #tpu.memory_space<vmem>>, vector<2x1xf32>,
    return
  }
}

</mosaic_0001>

<bundles_post_ra>
// kernel: tpu_custom_call.1
= control target key start
LH: loop header
LB: loop body
LE: loop exit
PB: predicated region body
PF: predicated region fallthrough
CT: control target
= control target key end

     0   :  { %s5974_s0 = inlined_call_operand.vmem [shape: f32[2,8,4], index: 0, kind: input, shape index: {}]   ;;  %s5975_s1 = inlined_call_operand.vmem [shape: f32[8,32], index: 1, kind: input, shape index: {}]   ;;  %s5976_s2 = inlined_call_operand.hbm [shape: f32[4,32], index: 2, kind: input, shape index: {}]   ;;  %s5977_s3 = inlined_call_operand.vmem [shape: f32[1,32], index: 3, kind: input, shape index: {}]   ;;  %s5978_s4 = inlined_call_operand.vmem [shape: f32[2,32,32], index: 4, kind: input, shape index: {}]   ;;  %s5979_s5 = inlined_call_operand.vmem [shape: f32[2,1,32], index: 5, kind: input, shape index: {}]   ;;  %s5980_s6 = inlined_call_operand.hbm [shape: f32[2,32,32], index: 6, kind: input, shape index: {}]   ;;  %s5981_s7 = inlined_call_operand.vmem [shape: f32[2,1,32], index: 7, kind: input, shape index: {}]   ;;  %s5982_s8 = inlined_call_operand.hbm [shape: f32[2,32,32], index: 8, kind: input, shape index: {}]   ;;  %s5983_s9 = inlined_call_operand.vmem [shape: f32[2,1,32], index: 9, kind: input, shape index: {}]   ;;  %s5984_s10 = inlined_call_operand.hbm [shape: f32[2,32,32], index: 10, kind: input, shape index: {}]   ;;  %s5985_s11 = inlined_call_operand.vmem [shape: f32[2,1,32], index: 11, kind: input, shape index: {}]   ;;  %s5986_s12 = inlined_call_operand.hbm [shape: f32[2,32,32], index: 12, kind: input, shape index: {}]   ;;  %s5987_s13 = inlined_call_operand.vmem [shape: f32[2,1,32], index: 13, kind: input, shape index: {}]   ;;  %s5988_s14 = inlined_call_operand.hbm [shape: f32[2,32,32], index: 14, kind: input, shape index: {}]   ;;  %s5989_s15 = inlined_call_operand.vmem [shape: f32[2,1,32], index: 15, kind: input, shape index: {}]   ;;  %s5990_s16 = inlined_call_operand.vmem [shape: f32[2,1,32], index: 16, kind: input, shape index: {}]   ;;  %s5991_s17 = inlined_call_operand.vmem [shape: f32[2,1,32], index: 17, kind: input, shape index: {}]   ;;  %s5992_s18 = inlined_call_operand.vmem [shape: f32[2,1,32], index: 18, kind: input, shape index: {}]   ;;  %s5993_s19 = inlined_call_operand.vmem [shape: f32[2,1,32], index: 19, kind: input, shape index: {}]   ;;  %s5994_s20 = inlined_call_operand.vmem [shape: f32[32,1], index: 20, kind: input, shape index: {}]   ;;  %s5995_s21 = inlined_call_operand.<no memory space> [shape: f32[1,1], index: 21, kind: input, shape index: {}]   ;;  %s5996_s22 = inlined_call_operand.vmem [shape: f32[2,1], index: 22, kind: output, shape index: {}]  }
   0x1   :  { %6002 = sst [smem:[#allocation17_spill]] %s5974_s0  ;;  %v27_v0 = vstv %s5995_s21 }
   0x2   :  { %6003 = sst [smem:[#allocation18_spill]] %s5975_s1  ;;  %28 = vst [vmem:[#allocation2] sm:$0x1] %v27_v0 }
   0x3   :  { %6004 = sst [smem:[#allocation19_spill]] %s5976_s2 }
   0x4   :  { %6005 = sst [smem:[#allocation20_spill]] %s5977_s3 }
   0x5   :  { %6006 = sst [smem:[#allocation21_spill]] %s5978_s4 }
   0x6   :  { %6007 = sst [smem:[#allocation22_spill]] %s5979_s5 }
   0x7   :  { %6008 = sst [smem:[#allocation23_spill]] %s5980_s6 }
   0x8   :  { %6009 = sst [smem:[#allocation24_spill]] %s5996_s22 }
   0x9   :  { %29 = vsyncpa [#allocation4], 0 }
   0xa   :  { %30 = vsyncpa [#allocation6], 0 }
   0xb   :  { %31 = vsyncpa [#allocation9], 0 }
   0xc   :  { %32 = vsyncpa [#allocation12], 0  ;;  %s5241_s29 = smov [#allocation5]   ;;  %s6010_s23 = sld [smem:[#allocation23_spill]] }
   0xd   :  { %s58_s30 = sshll.u32 %s5241_s29, 4  ;;  %s59_s30 = int_to_ptr.vmem [resolvable:$true] %s58_s30 }
  0x12   :  { %s5101_s1 = scalar_lea.hbm %s6010_s23, 1024 }
  0x13   :  { %p5102_p0 = scmp.ne.s32.totalorder %s6010_s23, %s5101_s1  ;;  %p5105_p1 = scmp.lt.u32.totalorder %s5101_s1, %s6010_s23 }
  0x15   :  { %p5107_p2 = pnand %p5105_p1, %p5102_p0 }
  0x17   :  { %5110 = shalt.err (!%p5107_p2)
}
  0x18   :  { %s5111_s21 = scalar_lea.vmem %s59_s30, 1024  ;;  %p5116_p4 = scmp.lt.s32.totalorder %s59_s30, %s59_s30 }
  0x19   :  { %p5112_p3 = scmp.ne.s32.totalorder %s59_s30, %s5111_s21  ;;  %p5117_p5 = scmp.lt.s32.totalorder %s5111_s21, %s5111_s21 }
  0x1b   :  { %p5118_p6 = por %p5117_p5, %p5116_p4 }
  0x1d   :  { %p5119_p7 = pnand %p5118_p6, %p5112_p3 }
  0x1f   :  { %5122 = shalt.err (!%p5119_p7)
}
  0x20   :  { %s5242_s26 = smov 128   ;;  %s5243_s2 = smov 8  }
  0x21   :  { %64 = dma.hbm_to_vmem [thread:$0]  %s6010_s23, 1024, %s59_s30, [#allocation6], %s5242_s26, %s5242_s26, %s5243_s2  }
  0x22   :  { %s5244_s28 = smov [#allocation8]   ;;  %s5245_s4 = smov [#allocation3]  }
  0x23   :  { %s86_s29 = sshll.u32 %s5244_s28, 4  ;;  %s43_s0 = sshll.u32 %s5245_s4, 4  ;;  %s87_s29 = int_to_ptr.vmem [resolvable:$true] %s86_s29  ;;  %s44_s0 = int_to_ptr.vmem [resolvable:$true] %s43_s0 }
  0x24   :  { %s5123_s24 = scalar_lea.hbm %s5984_s10, 1024 }
  0x25   :  { %p5124_p8 = scmp.ne.s32.totalorder %s5984_s10, %s5123_s24  ;;  %p5127_p9 = scmp.lt.u32.totalorder %s5123_s24, %s5984_s10 }
  0x27   :  { %p5129_p10 = pnand %p5127_p9, %p5124_p8 }
  0x29   :  { %5132 = shalt.err (!%p5129_p10)
}
  0x2a   :  { %s5133_s30 = scalar_lea.vmem %s87_s29, 1024  ;;  %p5138_p12 = scmp.lt.s32.totalorder %s87_s29, %s87_s29 }
  0x2b   :  { %p5134_p11 = scmp.ne.s32.totalorder %s87_s29, %s5133_s30  ;;  %p5139_p13 = scmp.lt.s32.totalorder %s5133_s30, %s5133_s30 }
  0x2d   :  { %p5140_p0 = por %p5139_p13, %p5138_p12 }
  0x2f   :  { %p5141_p1 = pnand %p5140_p0, %p5134_p11 }
  0x31   :  { %5144 = shalt.err (!%p5141_p1)
}
  0x32   :  { %92 = dma.hbm_to_vmem [thread:$0]  %s5984_s10, 1024, %s87_s29, [#allocation9], %s5242_s26, %s5242_s26, %s5243_s2  }
  0x33   :  { %s6011_s28 = sld [smem:[#allocation19_spill]] }
  0x39   :  { %s5145_s4 = scalar_lea.hbm %s6011_s28, 64 }
  0x3a   :  { %p5146_p2 = scmp.ne.s32.totalorder %s6011_s28, %s5145_s4  ;;  %p5149_p3 = scmp.lt.u32.totalorder %s5145_s4, %s6011_s28 }
  0x3c   :  { %p5151_p4 = pnand %p5149_p3, %p5146_p2 }
  0x3e   :  { %5154 = shalt.err (!%p5151_p4)
}
  0x3f   :  { %s5155_s25 = scalar_lea.vmem %s44_s0, 64  ;;  %p5160_p6 = scmp.lt.s32.totalorder %s44_s0, %s44_s0 }
  0x40   :  { %p5156_p5 = scmp.ne.s32.totalorder %s44_s0, %s5155_s25  ;;  %p5161_p7 = scmp.lt.s32.totalorder %s5155_s25, %s5155_s25 }
  0x42   :  { %p5162_p8 = por %p5161_p7, %p5160_p6 }
  0x44   :  { %p5163_p9 = pnand %p5162_p8, %p5156_p5 }
  0x46   :  { %5166 = shalt.err (!%p5163_p9)
}
  0x47   :  { %46 = dma.hbm_to_vmem [thread:$0]  %s6011_s28, 64, %s44_s0, [#allocation4]  }
  0x48   :  { %s5246_s21 = smov [#allocation7]   ;;  %s5247_s23 = smov [#allocation10]  }
  0x49   :  { %s72_s30 = sshll.u32 %s5246_s21, 4  ;;  %s100_s27 = sshll.u32 %s5247_s23, 4  ;;  %s73_s30 = int_to_ptr.vmem [resolvable:$true] %s72_s30  ;;  %s101_s27 = int_to_ptr.vmem [resolvable:$true] %s100_s27 }
  0x4a   :  { %s5167_s4 = scalar_lea.hbm %s5982_s8, 1024 }
  0x4b   :  { %p5168_p10 = scmp.ne.s32.totalorder %s5982_s8, %s5167_s4  ;;  %p5171_p11 = scmp.lt.u32.totalorder %s5167_s4, %s5982_s8 }
  0x4d   :  { %p5173_p12 = pnand %p5171_p11, %p5168_p10 }
  0x4f   :  { %5176 = shalt.err (!%p5173_p12)
}
  0x50   :  { %s5177_s0 = scalar_lea.vmem %s73_s30, 1024  ;;  %p5182_p0 = scmp.lt.s32.totalorder %s73_s30, %s73_s30 }
  0x51   :  { %p5178_p13 = scmp.ne.s32.totalorder %s73_s30, %s5177_s0  ;;  %p5183_p1 = scmp.lt.s32.totalorder %s5177_s0, %s5177_s0 }
  0x53   :  { %p5184_p2 = por %p5183_p1, %p5182_p0 }
  0x55   :  { %p5185_p3 = pnand %p5184_p2, %p5178_p13 }
  0x57   :  { %5188 = shalt.err (!%p5185_p3)
}
  0x58   :  { %78 = dma.hbm_to_vmem [thread:$0]  %s5982_s8, 1024, %s73_s30, [#allocation6], %s5242_s26, %s5242_s26, %s5243_s2  }
  0x59   :  { %s5189_s21 = scalar_lea.hbm %s5986_s12, 1024 }
  0x5a   :  { %p5190_p4 = scmp.ne.s32.totalorder %s5986_s12, %s5189_s21  ;;  %p5193_p5 = scmp.lt.u32.totalorder %s5189_s21, %s5986_s12 }
  0x5c   :  { %p5195_p6 = pnand %p5193_p5, %p5190_p4 }
  0x5e   :  { %5198 = shalt.err (!%p5195_p6)
}
  0x5f   :  { %s5199_s1 = scalar_lea.vmem %s101_s27, 1024  ;;  %p5204_p8 = scmp.lt.s32.totalorder %s101_s27, %s101_s27 }
  0x60   :  { %p5200_p7 = scmp.ne.s32.totalorder %s101_s27, %s5199_s1  ;;  %p5205_p9 = scmp.lt.s32.totalorder %s5199_s1, %s5199_s1 }
  0x62   :  { %p5206_p10 = por %p5205_p9, %p5204_p8 }
  0x64   :  { %p5207_p11 = pnand %p5206_p10, %p5200_p7 }
  0x66   :  { %5210 = shalt.err (!%p5207_p11)
}
  0x67   :  { %106 = dma.hbm_to_vmem [thread:$0]  %s5986_s12, 1024, %s101_s27, [#allocation9], %s5242_s26, %s5242_s26, %s5243_s2  }
  0x68   :  { %s5248_s5 = smov [#allocation11]   ;;  %s5211_s28 = scalar_lea.hbm %s5988_s14, 1024 }
  0x69   :  { %s114_s24 = sshll.u32 %s5248_s5, 4  ;;  %p5212_p12 = scmp.ne.s32.totalorder %s5988_s14, %s5211_s28  ;;  %s115_s24 = int_to_ptr.vmem [resolvable:$true] %s114_s24 }
  0x6a   :  { %p5215_p13 = scmp.lt.u32.totalorder %s5211_s28, %s5988_s14 }
  0x6c   :  { %p5217_p0 = pnand %p5215_p13, %p5212_p12 }
  0x6e   :  { %5220 = shalt.err (!%p5217_p0)
}
  0x6f   :  { %s5221_s23 = scalar_lea.vmem %s115_s24, 1024  ;;  %p5226_p2 = scmp.lt.s32.totalorder %s115_s24, %s115_s24 }
  0x70   :  { %p5222_p1 = scmp.ne.s32.totalorder %s115_s24, %s5221_s23  ;;  %p5227_p3 = scmp.lt.s32.totalorder %s5221_s23, %s5221_s23 }
  0x72   :  { %p5228_p4 = por %p5227_p3, %p5226_p2 }
  0x74   :  { %p5229_p5 = pnand %p5228_p4, %p5222_p1 }
  0x76   :  { %5232 = shalt.err (!%p5229_p5)
}
  0x77   :  { %120 = dma.hbm_to_vmem [thread:$0]  %s5988_s14, 1024, %s115_s24, [#allocation12], %s5242_s26, %s5242_s26, %s5243_s2  }
  0x78   :  { %5233 = dma.done.wait [#allocation4], 64  }
  0x79   :  { %5234 = vsyncadd [#allocation4], 4294967232 }
  0x7a   :  { %5235 = dma.done.wait [#allocation6], 2048  }
  0x7b   :  { %5236 = vsyncadd [#allocation6], 4294965248 }
  0x7c   :  { %5237 = dma.done.wait [#allocation9], 2048  }
  0x7d   :  { %5238 = vsyncadd [#allocation9], 4294965248 }
  0x7e   :  { %5239 = dma.done.wait [#allocation12], 1024  }
  0x7f   :  { %5240 = vsyncadd [#allocation12], 4294966272  ;;  %vm170_vm0 = vcmask 1043456   ;;  %vm163_vm1 = vcmask 31744   ;;  %v155_v1 = vld [vmem:[#allocation3] sm:$0xf] }
  0x80   :  { %s6012_s4 = sld [smem:[#allocation17_spill]]  ;;  %4595 = vmatprep.subr.msk.mxu0 %vm170_vm0, %v155_v1  ;;  %s6013_s30 = sld [smem:[#allocation21_spill]]  ;;  %v345_v6 = vld [vmem:[#allocation5] sm:$0xff]  ;;  %v346_v8 = vld [vmem:[#allocation5 + $0x8] sm:$0xff]  ;;  %v347_v13 = vld [vmem:[#allocation5 + $0x10] sm:$0xff]  ;;  %vm263_vm2 = vcmask 261120  }
  0x81   :  { %4596 = vmatpush3.msk.msra.mxu0 %vm170_vm0, %v155_v1  ;;  %v4911_v9 = vpack.c.bf16 %v346_v8, %v345_v6  ;;  %v348_v14 = vld [vmem:[#allocation5 + $0x18] sm:$0xff]  ;;  %v431_v16 = vld [vmem:[#allocation7] sm:$0xff]  ;;  %v432_v17 = vld [vmem:[#allocation7 + $0x8] sm:$0xff]  ;;  %s6014_s21 = sld [smem:[#allocation20_spill]]  ;;  %s6015_s27 = sld [smem:[#allocation18_spill]]  ;;  %v5249_v30 = vmov 0.0  }
  0x82   :  { %v4915_v15 = vpack.c.bf16 %v348_v14, %v347_v13  ;;  %v4919_v18 = vpack.c.bf16 %v432_v17, %v431_v16  ;;  %v433_v25 = vld [vmem:[#allocation7 + $0x10] sm:$0xff]  ;;  %v434_v26 = vld [vmem:[#allocation7 + $0x18] sm:$0xff]  ;;  %vm5250_vm3 = vmmov 0   ;;  %vm517_vm4 = vcmask 64512   ;;  %s6016_s8 = sld [smem:[#allocation22_spill]]  ;;  %s5251_s14 = smov 120  }
  0x83   :  { %4912 = vmatprep.subr.bf16.mxu0 %v4911_v9  ;;  %v4923_v29 = vpack.c.bf16 %v434_v26, %v433_v25  ;;  %v4346_v31 = vld [vmem:[%s5981_s7] ss:$0 sm:$0xff]  ;;  %s5252_s24 = smov 112   ;;  %s5253_s6 = smov 104   ;;  %vm1859_vm5 = vcmask 195584   ;;  %vm1856_vm6 = vcmask 130048  }
  0x84   :  { %v4349_v40 = vld [vmem:[%s5983_s9] ss:$0 sm:$0xff]  ;;  %s5254_s0 = smov 16   ;;  %s5255_s28 = smov 24   ;;  %vm4255_vm7 = vcmask 1041409   ;;  %vm4329_vm8 = vcmask 1024  }
  0x85   :  { %s6017_s3 = sld [smem:[#allocation24_spill]] }
  0x86   :  { %v153_v2 = vld [vmem:[%s6012_s4] sm:$0xff]  ;;  %v154_v3 = vld [vmem:[%s6012_s4 + $0x8] sm:$0xff]  ;;  %v254_v10 = vld [vmem:[%s6013_s30 + $0x10] sm:$0xff] }
  0x87   :  { %4597 = vmatprep.mubr.msk.f32.mxu0 %vm163_vm1, %v153_v2  ;;  %v252_v4 = vld [vmem:[%s6013_s30] sm:$0xff]  ;;  %v253_v5 = vld [vmem:[%s6013_s30 + $0x8] sm:$0xff]  ;;  %v255_v11 = vld [vmem:[%s6013_s30 + $0x18] sm:$0xff] }
  0x88   :  { %v4903_v7 = vpack.c.bf16 %v253_v5, %v252_v4  ;;  %4598 = vmatmul.mubr.msk.f32.vlgmr.msra.gmra.mrb[0].mxu0 %vm163_vm1, %v154_v3  ;;  %v4907_v12 = vpack.c.bf16 %v255_v11, %v254_v10  ;;  %v4339_v19 = vld [vmem:[%s6014_s21] ss:$0 sm:$0xff] }
  0x89   :  { %4914 = vmatpush3.bf16.msra.mxu0 %v4911_v9  ;;  %v249_v22 = vld [vmem:[%s6015_s27] sm:$0xff] }
  0x8a   :  { %4904 = vmatprep.subr.bf16.mxu1 %v4903_v7  ;;  %4916 = vmatprep.subr.bf16.mxu0 %v4915_v15  ;;  %v4343_v37 = vld [vmem:[%s6016_s8] ss:$0 sm:$0xff] }
  0x8b   :  { %4906 = vmatpush3.bf16.msra.mxu1 %v4903_v7 }
  0x8c   :  { %4908 = vmatprep.subr.bf16.mxu1 %v4907_v12 }
  0x8d   :  { %4918 = vmatpush3.bf16.msra.mxu0 %v4915_v15 }
  0x8e   :  { %4633 = vmatprep.subr.mxu0 %v5249_v30 }
  0x8f   :  { %4910 = vmatpush3.bf16.msra.mxu1 %v4907_v12 }
  0x90   :  { %4920 = vmatprep.subr.bf16.mxu1 %v4919_v18 }
 0x15b   :  { %v4599_v20 = vpop.f32.mrb[0].mxu0 }
 0x15c   :  { %v246_v21 = vadd.f32 %v4599_v20, %v4339_v19  ;;  %v240_v23 = vpop.f32.mrb[1].mxu0 }
 0x15d   :  { %v241_v24 = vadd.f32 %v4339_v19, %v240_v23 }
 0x15e   :  { %v5488_v28 = vadd.f32 %v249_v22, %v246_v21 }
 0x15f   :  { %v5486_v27 = vadd.f32 %v249_v22, %v241_v24 }
 0x161   :  { %4608 = vmatprep.mubr.msk.f32.mxu1 %vm263_vm2, %v5486_v27  ;;  %4619 = vmatprep.mubr.msk.f32.mxu0 %vm263_vm2, %v5486_v27 }
 0x162   :  { %4609 = vmatmul.mubr.msk.f32.vlgmr.msra.gmra.mrb[0].mxu1 %vm263_vm2, %v5488_v28  ;;  %4620 = vmatmul.mubr.msk.f32.vlgmr.msra.gmra.mrb[2].mxu0 %vm263_vm2, %v5488_v28 }
 0x163   :  { %4922 = vmatpush3.bf16.msra.mxu1 %v4919_v18  ;;  %4630 = vmatprep.mubr.msk.f32.mxu1 %vm263_vm2, %v5486_v27 }
 0x164   :  { %4924 = vmatprep.subr.bf16.mxu1 %v4923_v29  ;;  %4635 = vmatprep.mubr.msk.f32.mxu0 %vm5250_vm3, %v5249_v30 }
 0x167   :  { %4926 = vmatpush3.bf16.msra.mxu1 %v4923_v29 }
 0x168   :  { %4643 = vmatprep.subr.mxu1 %v5249_v30 }
 0x16a   :  { %4631 = vmatmul.mubr.msk.f32.vlgmr.msra.gmra.mrb[2].mxu1 %vm263_vm2, %v5488_v28 }
 0x16b   :  { %4645 = vmatprep.mubr.msk.f32.mxu1 %vm5250_vm3, %v5249_v30 }
 0x235   :  { %v4610_v32 = vpop.f32.mrb[0].mxu1  ;;  %v4621_v33 = vpop.f32.mrb[2].mxu0 }
 0x236   :  { %v5511_v34 = vadd.f32 %v4621_v33, %v4346_v31  ;;  %v336_v35 = vpop.f32.mrb[1].mxu1  ;;  %v422_v36 = vpop.f32.mrb[3].mxu0  ;;  %v5536_v42 = vadd.f32 %v4610_v32, %v4343_v37 }
 0x237   :  { %v5516_v38 = vadd.f32 %v4346_v31, %v422_v36  ;;  %v5522_v39 = vadd.f32 %v4343_v37, %v336_v35 }
 0x238   :  { %918 = vrot.lane.b32.xlu1 %v5511_v34, %s5251_s14 }
 0x239   :  { %4634 = vmatpush3.xpose.msk.msra.mxu0 %vm517_vm4, %v5516_v38 }
 0x23a   :  { %4638 = vmatprep.subr.mxu0 %v5249_v30 }
 0x23c   :  { %838 = vrot.lane.b32.xlu1 %v5522_v39, %s5251_s14  ;;  %4636 = vmatmul.mubr.msk.f32.vlgmr.msra.gmra.mrb[4].mxu0 %vm517_vm4, %v5522_v39 }
 0x23d   :  { %v4632_v41 = vpop.f32.mrb[2].mxu1  ;;  %4639 = vmatpush3.xpose.msk.msra.mxu0 %vm517_vm4, %v5511_v34  ;;  %4640 = vmatprep.mubr.msk.f32.mxu0 %vm5250_vm3, %v5249_v30 }
 0x23e   :  { %v508_v43 = vpop.f32.mrb[3].mxu1  ;;  %4648 = vmatprep.subr.mxu0 %v5249_v30  ;;  %v5539_v44 = vadd.f32 %v4632_v41, %v4349_v40 }
 0x23f   :  { %v5541_v45 = vadd.f32 %v4349_v40, %v508_v43 }
 0x240   :  { %4641 = vmatmul.mubr.msk.f32.vlgmr.msra.gmra.mrb[6].mxu0 %vm517_vm4, %v5536_v42 }
 0x241   :  { %4644 = vmatpush3.msra.mxu1 %v5541_v45  ;;  %4649 = vmatpush3.msra.mxu0 %v5539_v44 }
 0x242   :  { %4653 = vmatprep.subr.mxu1 %v5249_v30  ;;  %4650 = vmatprep.mubr.msk.f32.mxu0 %vm5250_vm3, %v5249_v30 }
 0x243   :  { %4658 = vmatprep.subr.mxu0 %v5249_v30 }
 0x2aa   :  { %v919_v62 = vpop.permute.xlu1 %918 }
 0x2ae   :  { %v839_v63 = vpop.permute.xlu1 %838 }
 0x30f   :  { %v590_v46 = vpop.f32.mrb[4].mxu0 }
 0x310   :  { %v4637_v47 = vpop.f32.mrb[5].mxu0  ;;  %v670_v48 = vsel %vm517_vm4, %v590_v46, -inf }
 0x311   :  { %671 = vmax.xlane.f32.xlu0 %v670_v48 }
 0x313   :  { %v666_v49 = vpop.f32.mrb[6].mxu0 }
 0x314   :  { %v4642_v50 = vpop.f32.mrb[7].mxu0  ;;  %v673_v51 = vsel %vm517_vm4, %v666_v49, -inf }
 0x315   :  { %674 = vmax.xlane.f32.xlu0 %v673_v51 }
 0x32b   :  { %840 = vrot.lane.b32.xlu0 %v5516_v38, %s5251_s14 }
 0x39e   :  { %v672_v52 = vpop.xlane.xlu0 %671 }
 0x39f   :  { %v676_v53 = vsub.f32 %v590_v46, %v672_v52 }
 0x3a1   :  { %v678_v54 = vmul.f32 1.442695, %v676_v53 }
 0x3a2   :  { %v675_v55 = vpop.xlane.xlu0 %674 }
 0x3a3   :  { %5021 = vpow2.f32 %v678_v54  ;;  %v677_v56 = vsub.f32 %v666_v49, %v675_v55 }
 0x3a5   :  { %v680_v57 = vmul.f32 1.442695, %v677_v56 }
 0x3a6   :  { %v841_v4 = vpop.permute.xlu0 %840 }
 0x3a7   :  { %5023 = vpow2.f32 %v680_v57 }
 0x3ad   :  { %v5022_v58 = vpop.eup %5021 }
 0x3ae   :  { %v682_v59 = vsel %vm517_vm4, %v5022_v58, 0.0 }
 0x3af   :  { %683 = vadd.xlane.f32.xlu1 %v682_v59 }
 0x3b1   :  { %v5024_v60 = vpop.eup %5023 }
 0x3b2   :  { %v685_v61 = vsel %vm517_vm4, %v5024_v60, 0.0 }
 0x3b3   :  { %686 = vadd.xlane.f32.xlu1 %v685_v61 }
 0x3c4   :  { %916 = vrot.lane.b32.xlu1 %v5536_v42, %s5251_s14 }
 0x43c   :  { %v684_v0 = vpop.xlane.xlu1 %683 }
 0x43d   :  { %5025 = vrcp.f32 %v684_v0 }
 0x440   :  { %v687_v1 = vpop.xlane.xlu1 %686 }
 0x441   :  { %5027 = vrcp.f32 %v687_v1 }
 0x444   :  { %v917_v7 = vpop.permute.xlu1 %916 }
 0x447   :  { %v5026_v2 = vpop.eup %5025 }
 0x448   :  { %v690_v3 = vmul.f32 %v5026_v2, %v5022_v58 }
 0x44a   :  { %4646 = vmatmul.mubr.msk.f32.vlgmr.msra.gmra.mrb[4].mxu1 %vm517_vm4, %v690_v3 }
 0x44b   :  { %v5028_v5 = vpop.eup %5027  ;;  %4654 = vmatpush3.xpose.msk.msra.mxu1 %vm517_vm4, %v841_v4  ;;  %4655 = vmatprep.mubr.msk.f32.mxu1 %vm5250_vm3, %v5249_v30 }
 0x44c   :  { %v691_v6 = vmul.f32 %v5028_v5, %v5024_v60  ;;  %4663 = vmatprep.subr.mxu1 %v5249_v30 }
 0x44e   :  { %4651 = vmatmul.mubr.msk.f32.vlgmr.msra.gmra.mrb[8].mxu0 %vm517_vm4, %v691_v6  ;;  %4656 = vmatmul.mubr.msk.f32.vlgmr.msra.gmra.mrb[6].mxu1 %vm517_vm4, %v839_v63 }
 0x44f   :  { %4659 = vmatpush3.xpose.msk.msra.mxu0 %vm517_vm4, %v919_v62  ;;  %4660 = vmatprep.mubr.msk.f32.mxu0 %vm5250_vm3, %v5249_v30 }
 0x450   :  { %4668 = vmatprep.subr.mxu0 %v5249_v30  ;;  %4665 = vmatprep.mubr.msk.f32.mxu1 %vm5250_vm3, %v5249_v30 }
 0x452   :  { %4661 = vmatmul.mubr.msk.f32.vlgmr.msra.gmra.mrb[10].mxu0 %vm517_vm4, %v917_v7 }
 0x453   :  { %4670 = vmatprep.mubr.msk.f32.mxu0 %vm5250_vm3, %v5249_v30 }
 0x51d   :  { %v5575_v8 = vpop.f32.mrb[4].mxu1 }
 0x51e   :  { %v4647_v9 = vpop.f32.mrb[5].mxu1 }
 0x521   :  { %v5577_v10 = vpop.f32.mrb[8].mxu0  ;;  %v912_v11 = vpop.f32.mrb[6].mxu1 }
 0x522   :  { %v4652_v12 = vpop.f32.mrb[9].mxu0  ;;  %v4657_v13 = vpop.f32.mrb[7].mxu1  ;;  %v994_v14 = vsel %vm517_vm4, %v912_v11, -inf }
 0x523   :  { %995 = vmax.xlane.f32.xlu0 %v994_v14 }
 0x525   :  { %v990_v15 = vpop.f32.mrb[10].mxu0 }
 0x526   :  { %v4662_v16 = vpop.f32.mrb[11].mxu0  ;;  %v997_v17 = vsel %vm517_vm4, %v990_v15, -inf }
 0x527   :  { %998 = vmax.xlane.f32.xlu1 %v997_v17 }
 0x538   :  { %1094 = vrot.lane.b32.xlu1 %v5539_v44, %s5251_s14 }
 0x539   :  { %1017 = vrot.lane.b32.xlu0 %v5541_v45, %s5251_s14 }
 0x53c   :  { %1172 = vrot.lane.b32.xlu1 %v5516_v38, %s5252_s24 }
 0x540   :  { %1250 = vrot.lane.b32.xlu1 %v5511_v34, %s5252_s24 }
 0x544   :  { %1248 = vrot.lane.b32.xlu1 %v5536_v42, %s5252_s24 }
 0x5b0   :  { %v996_v18 = vpop.xlane.xlu0 %995 }
 0x5b1   :  { %v1000_v19 = vsub.f32 %v912_v11, %v996_v18 }
 0x5b3   :  { %v1002_v20 = vmul.f32 1.442695, %v1000_v19 }
 0x5b4   :  { %v1018_v21 = vpop.permute.xlu0 %1017  ;;  %v999_v22 = vpop.xlane.xlu1 %998 }
 0x5b5   :  { %5029 = vpow2.f32 %v1002_v20  ;;  %v1001_v23 = vsub.f32 %v990_v15, %v999_v22  ;;  %4664 = vmatpush3.msra.mxu1 %v1018_v21 }
 0x5b6   :  { %4673 = vmatprep.subr.mxu1 %v5249_v30 }
 0x5b7   :  { %v1004_v24 = vmul.f32 1.442695, %v1001_v23 }
 0x5b8   :  { %v1095_v25 = vpop.permute.xlu1 %1094 }
 0x5b9   :  { %5031 = vpow2.f32 %v1004_v24  ;;  %4669 = vmatpush3.msra.mxu0 %v1095_v25 }
 0x5ba   :  { %4678 = vmatprep.subr.mxu0 %v5249_v30 }
 0x5bc   :  { %v1173_v36 = vpop.permute.xlu1 %1172 }
 0x5bf   :  { %v5030_v26 = vpop.eup %5029 }
 0x5c0   :  { %v1006_v29 = vsel %vm517_vm4, %v5030_v26, 0.0  ;;  %v1251_v43 = vpop.permute.xlu1 %1250 }
 0x5c1   :  { %1007 = vadd.xlane.f32.xlu0 %v1006_v29 }
 0x5c3   :  { %v5032_v31 = vpop.eup %5031 }
 0x5c4   :  { %v1009_v32 = vsel %vm517_vm4, %v5032_v31, 0.0  ;;  %v1249_v48 = vpop.permute.xlu1 %1248 }
 0x5c5   :  { %1010 = vadd.xlane.f32.xlu0 %v1009_v32 }
 0x5db   :  { %1170 = vrot.lane.b32.xlu0 %v5522_v39, %s5252_s24 }
 0x64e   :  { %v1008_v33 = vpop.xlane.xlu0 %1007 }
 0x64f   :  { %5033 = vrcp.f32 %v1008_v33 }
 0x652   :  { %v1011_v35 = vpop.xlane.xlu0 %1010 }
 0x653   :  { %5035 = vrcp.f32 %v1011_v35 }
 0x656   :  { %v1171_v47 = vpop.permute.xlu0 %1170 }
 0x659   :  { %v5034_v37 = vpop.eup %5033 }
 0x65a   :  { %v1014_v40 = vmul.f32 %v5034_v37, %v5030_v26 }
 0x65c   :  { %4666 = vmatmul.mubr.msk.f32.vlgmr.msra.gmra.mrb[8].mxu1 %vm517_vm4, %v1014_v40 }
 0x65d   :  { %v5036_v41 = vpop.eup %5035  ;;  %4674 = vmatpush3.xpose.msk.msra.mxu1 %vm517_vm4, %v1173_v36  ;;  %4675 = vmatprep.mubr.msk.f32.mxu1 %vm5250_vm3, %v5249_v30 }
 0x65e   :  { %v1015_v46 = vmul.f32 %v5036_v41, %v5032_v31  ;;  %4683 = vmatprep.subr.mxu1 %v5249_v30 }
 0x660   :  { %4671 = vmatmul.mubr.msk.f32.vlgmr.msra.gmra.mrb[12].mxu0 %vm517_vm4, %v1015_v46  ;;  %4676 = vmatmul.mubr.msk.f32.vlgmr.msra.gmra.mrb[10].mxu1 %vm517_vm4, %v1171_v47 }
 0x661   :  { %4679 = vmatpush3.xpose.msk.msra.mxu0 %vm517_vm4, %v1251_v43  ;;  %4680 = vmatprep.mubr.msk.f32.mxu0 %vm5250_vm3, %v5249_v30 }
 0x662   :  { %4688 = vmatprep.subr.mxu0 %v5249_v30  ;;  %4685 = vmatprep.mubr.msk.f32.mxu1 %vm5250_vm3, %v5249_v30 }
 0x664   :  { %4681 = vmatmul.mubr.msk.f32.vlgmr.msra.gmra.mrb[14].mxu0 %vm517_vm4, %v1249_v48 }
 0x665   :  { %4690 = vmatprep.mubr.msk.f32.mxu0 %vm5250_vm3, %v5249_v30 }
 0x72f   :  { %v5613_v49 = vpop.f32.mrb[8].mxu1 }
 0x730   :  { %v4667_v50 = vpop.f32.mrb[9].mxu1 }
 0x733   :  { %v5615_v51 = vpop.f32.mrb[12].mxu0  ;;  %v1244_v52 = vpop.f32.mrb[10].mxu1 }
 0x734   :  { %v4672_v53 = vpop.f32.mrb[13].mxu0  ;;  %v4677_v54 = vpop.f32.mrb[11].mxu1  ;;  %v1326_v55 = vsel %vm517_vm4, %v1244_v52, -inf }
 0x735   :  { %1327 = vmax.xlane.f32.xlu0 %v1326_v55  ;;  %v1865_v54 = vld [vmem:[#allocation8 + $0x18] sm:$0xff] }
 0x737   :  { %v1322_v56 = vpop.f32.mrb[14].mxu0 }
 0x738   :  { %v4682_v57 = vpop.f32.mrb[15].mxu0  ;;  %v1329_v58 = vsel %vm517_vm4, %v1322_v56, -inf }
 0x739   :  { %1330 = vmax.xlane.f32.xlu1 %v1329_v58 }
 0x74a   :  { %1424 = vrot.lane.b32.xlu1 %v5539_v44, %s5252_s24 }
 0x74b   :  { %1348 = vrot.lane.b32.xlu0 %v5541_v45, %s5252_s24 }
 0x74e   :  { %1502 = vrot.lane.b32.xlu1 %v5516_v38, %s5253_s6 }
 0x752   :  { %1580 = vrot.lane.b32.xlu1 %v5511_v34, %s5253_s6 }
 0x756   :  { %1578 = vrot.lane.b32.xlu1 %v5536_v42, %s5253_s6 }
 0x7c2   :  { %v1328_v59 = vpop.xlane.xlu0 %1327 }
 0x7c3   :  { %v1332_v60 = vsub.f32 %v1244_v52, %v1328_v59  ;;  %v1863_v52 = vld [vmem:[#allocation8 + $0x8] sm:$0xff] }
 0x7c5   :  { %v1334_v61 = vmul.f32 1.442695, %v1332_v60 }
 0x7c6   :  { %v1349_v62 = vpop.permute.xlu0 %1348  ;;  %v1331_v63 = vpop.xlane.xlu1 %1330 }
 0x7c7   :  { %5037 = vpow2.f32 %v1334_v61  ;;  %v1333_v0 = vsub.f32 %v1322_v56, %v1331_v63  ;;  %4684 = vmatpush3.msra.mxu1 %v1349_v62 }
 0x7c8   :  { %4693 = vmatprep.subr.mxu1 %v5249_v30 }
 0x7c9   :  { %v1336_v1 = vmul.f32 1.442695, %v1333_v0 }
 0x7ca   :  { %v1425_v2 = vpop.permute.xlu1 %1424 }
 0x7cb   :  { %5039 = vpow2.f32 %v1336_v1  ;;  %4689 = vmatpush3.msra.mxu0 %v1425_v2 }
 0x7cc   :  { %4698 = vmatprep.subr.mxu0 %v5249_v30 }
 0x7ce   :  { %v1503_v6 = vpop.permute.xlu1 %1502 }
 0x7d1   :  { %v5038_v34 = vpop.eup %5037 }
 0x7d2   :  { %v1338_v38 = vsel %vm517_vm4, %v5038_v34, 0.0  ;;  %v1581_v12 = vpop.permute.xlu1 %1580 }
 0x7d3   :  { %1339 = vadd.xlane.f32.xlu0 %v1338_v38 }
 0x7d5   :  { %v5040_v42 = vpop.eup %5039 }
 0x7d6   :  { %v1341_v3 = vsel %vm517_vm4, %v5040_v42, 0.0  ;;  %v1579_v14 = vpop.permute.xlu1 %1578 }
 0x7d7   :  { %1342 = vadd.xlane.f32.xlu0 %v1341_v3 }
 0x7ed   :  { %1500 = vrot.lane.b32.xlu0 %v5522_v39, %s5253_s6 }
 0x860   :  { %v1340_v4 = vpop.xlane.xlu0 %1339 }
 0x861   :  { %5041 = vrcp.f32 %v1340_v4 }
 0x864   :  { %v1343_v5 = vpop.xlane.xlu0 %1342 }
 0x865   :  { %5043 = vrcp.f32 %v1343_v5 }
 0x868   :  { %v1501_v39 = vpop.permute.xlu0 %1500 }
 0x86b   :  { %v5042_v7 = vpop.eup %5041 }
 0x86c   :  { %v1346_v9 = vmul.f32 %v5042_v7, %v5038_v34 }
 0x86e   :  { %4686 = vmatmul.mubr.msk.f32.vlgmr.msra.gmra.mrb[12].mxu1 %vm517_vm4, %v1346_v9 }
 0x86f   :  { %v5044_v11 = vpop.eup %5043  ;;  %4694 = vmatpush3.xpose.msk.msra.mxu1 %vm517_vm4, %v1503_v6  ;;  %4695 = vmatprep.mubr.msk.f32.mxu1 %vm5250_vm3, %v5249_v30 }
 0x870   :  { %v1347_v13 = vmul.f32 %v5044_v11, %v5040_v42  ;;  %4703 = vmatprep.subr.mxu1 %v5249_v30 }
 0x872   :  { %4691 = vmatmul.mubr.msk.f32.vlgmr.msra.gmra.mrb[16].mxu0 %vm517_vm4, %v1347_v13  ;;  %4696 = vmatmul.mubr.msk.f32.vlgmr.msra.gmra.mrb[14].mxu1 %vm517_vm4, %v1501_v39 }
 0x873   :  { %4699 = vmatpush3.xpose.msk.msra.mxu0 %vm517_vm4, %v1581_v12  ;;  %4700 = vmatprep.mubr.msk.f32.mxu0 %vm5250_vm3, %v5249_v30 }
 0x874   :  { %4708 = vmatprep.subr.mxu0 %v5249_v30  ;;  %4705 = vmatprep.mubr.msk.f32.mxu1 %vm5250_vm3, %v5249_v30 }
 0x876   :  { %4701 = vmatmul.mubr.msk.f32.vlgmr.msra.gmra.mrb[18].mxu0 %vm517_vm4, %v1579_v14 }
 0x877   :  { %4710 = vmatprep.mubr.msk.f32.mxu0 %vm5250_vm3, %v5249_v30 }
 0x941   :  { %v1420_v15 = vpop.f32.mrb[12].mxu1 }
 0x942   :  { %v4687_v16 = vpop.f32.mrb[13].mxu1 }
 0x945   :  { %v1496_v17 = vpop.f32.mrb[16].mxu0  ;;  %v1574_v18 = vpop.f32.mrb[14].mxu1 }
 0x946   :  { %v4692_v19 = vpop.f32.mrb[17].mxu0  ;;  %v4697_v20 = vpop.f32.mrb[15].mxu1  ;;  %v1656_v21 = vsel %vm517_vm4, %v1574_v18, -inf }
 0x947   :  { %1657 = vmax.xlane.f32.xlu0 %v1656_v21 }
 0x949   :  { %v1652_v22 = vpop.f32.mrb[18].mxu0 }
 0x94a   :  { %v4702_v23 = vpop.f32.mrb[19].mxu0  ;;  %v1659_v24 = vsel %vm517_vm4, %v1652_v22, -inf }
 0x94b   :  { %1660 = vmax.xlane.f32.xlu1 %v1659_v24  ;;  %v2003_v24 = vld [vmem:[#allocation10 + $0x10] sm:$0xff] }
 0x95c   :  { %1754 = vrot.lane.b32.xlu1 %v5539_v44, %s5253_s6 }
 0x960   :  { %1832 = vrot.lane.b32.xlu1 %v5613_v49, %s5243_s2 }
 0x964   :  { %1834 = vrot.lane.b32.xlu1 %v5615_v51, %s5243_s2  ;;  %v1862_v51 = vld [vmem:[#allocation8] sm:$0xff] }
 0x965   :  { %v4927_v53 = vpack.c.bf16 %v1863_v52, %v1862_v51 }
 0x968   :  { %1842 = vrot.lane.b32.xlu1 %v1496_v17, %s5254_s0 }
 0x9d4   :  { %v1658_v25 = vpop.xlane.xlu0 %1657 }
 0x9d5   :  { %v1662_v26 = vsub.f32 %v1574_v18, %v1658_v25  ;;  %v2004_v25 = vld [vmem:[#allocation10 + $0x18] sm:$0xff] }
 0x9d7   :  { %v1664_v29 = vmul.f32 1.442695, %v1662_v26  ;;  %v4939_v26 = vpack.c.bf16 %v2004_v25, %v2003_v24  ;;  %v2416_v24 = vld [vmem:[#allocation7 + $0x20] sm:$0xff]  ;;  %v2417_v25 = vld [vmem:[#allocation7 + $0x28] sm:$0xff] }
 0x9d8   :  { %v1661_v31 = vpop.xlane.xlu1 %1660 }
 0x9d9   :  { %5045 = vpow2.f32 %v1664_v29  ;;  %v1663_v32 = vsub.f32 %v1652_v22, %v1661_v31  ;;  %v2002_v22 = vld [vmem:[#allocation10 + $0x8] sm:$0xff]  ;;  %v2095_v29 = vld [vmem:[#allocation11] sm:$0xff] }
 0x9da   :  { %v2096_v31 = vld [vmem:[#allocation11 + $0x8] sm:$0xff] }
 0x9db   :  { %v1666_v33 = vmul.f32 1.442695, %v1663_v32  ;;  %v4943_v32 = vpack.c.bf16 %v2096_v31, %v2095_v29 }
 0x9dc   :  { %v1755_v35 = vpop.permute.xlu1 %1754 }
 0x9dd   :  { %5047 = vpow2.f32 %v1666_v33  ;;  %4709 = vmatpush3.msra.mxu0 %v1755_v35 }
 0x9e0   :  { %v1833_v60 = vpop.permute.xlu1 %1832 }
 0x9e1   :  { %v1854_v63 = vsel %vm517_vm4, %v5575_v8, %v1833_v60  ;;  %v4376_v8 = vld [vmem:[%s5985_s11] ss:$0 sm:$0xff] }
 0x9e3   :  { %v5046_v44 = vpop.eup %5045 }
 0x9e4   :  { %v1668_v36 = vsel %vm517_vm4, %v5046_v44, 0.0  ;;  %v1835_v61 = vpop.permute.xlu1 %1834 }
 0x9e5   :  { %1669 = vadd.xlane.f32.xlu0 %v1668_v36  ;;  %v1855_v38 = vsel %vm517_vm4, %v5577_v10, %v1835_v61 }
 0x9e7   :  { %v5048_v37 = vpop.eup %5047 }
 0x9e8   :  { %v1671_v40 = vsel %vm517_vm4, %v5048_v37, 0.0  ;;  %v1843_v0 = vpop.permute.xlu1 %1842 }
 0x9e9   :  { %1672 = vadd.xlane.f32.xlu0 %v1671_v40  ;;  %v1858_v42 = vsel %vm1856_vm6, %v1855_v38, %v1843_v0 }
 0x9ff   :  { %1678 = vrot.lane.b32.xlu0 %v5541_v45, %s5253_s6  ;;  %v1864_v45 = vld [vmem:[#allocation8 + $0x10] sm:$0xff] }
 0xa00   :  { %v4931_v55 = vpack.c.bf16 %v1865_v54, %v1864_v45  ;;  %v2097_v45 = vld [vmem:[#allocation11 + $0x10] sm:$0xff]  ;;  %v2098_v54 = vld [vmem:[#allocation11 + $0x18] sm:$0xff] }
 0xa03   :  { %1840 = vrot.lane.b32.xlu0 %v1420_v15, %s5254_s0 }
 0xa72   :  { %v1670_v41 = vpop.xlane.xlu0 %1669 }
 0xa73   :  { %5049 = vrcp.f32 %v1670_v41 }
 0xa76   :  { %v1673_v43 = vpop.xlane.xlu0 %1672 }
 0xa77   :  { %5051 = vrcp.f32 %v1673_v43  ;;  %v4379_v43 = vld [vmem:[%s5990_s16] ss:$0 sm:$0xff] }
 0xa7a   :  { %v1679_v46 = vpop.permute.xlu0 %1678 }
 0xa7b   :  { %4704 = vmatpush3.msra.mxu1 %v1679_v46 }
 0xa7c   :  { %4928 = vmatprep.subr.bf16.mxu1 %v4927_v53 }
 0xa7d   :  { %v5050_v47 = vpop.eup %5049 }
 0xa7e   :  { %v1676_v48 = vmul.f32 %v5050_v47, %v5046_v44  ;;  %v1841_v62 = vpop.permute.xlu0 %1840  ;;  %v4380_v47 = vld [vmem:[%s5991_s17] ss:$0 sm:$0xff] }
 0xa7f   :  { %v1857_v1 = vsel %vm1856_vm6, %v1854_v63, %v1841_v62  ;;  %v4384_v63 = vld [vmem:[%s5989_s15] ss:$0 sm:$0xff] }
 0xa80   :  { %4706 = vmatmul.mubr.msk.f32.vlgmr.msra.gmra.mrb[16].mxu1 %vm517_vm4, %v1676_v48 }
 0xa81   :  { %v5052_v49 = vpop.eup %5051  ;;  %4930 = vmatpush3.bf16.msra.mxu1 %v4927_v53 }
 0xa82   :  { %v1677_v50 = vmul.f32 %v5052_v49, %v5048_v37  ;;  %4932 = vmatprep.subr.bf16.mxu1 %v4931_v55 }
 0xa84   :  { %4711 = vmatmul.mubr.msk.f32.vlgmr.msra.gmra.mrb[20].mxu0 %vm517_vm4, %v1677_v50 }
 0xa85   :  { %4934 = vmatpush3.bf16.msra.mxu1 %v4931_v55  ;;  %v4947_v55 = vpack.c.bf16 %v2098_v54, %v2097_v45  ;;  %v4398_v45 = vld [vmem:[%s5981_s7 + $0x1] ss:$0 sm:$0xff] }
 0xa86   :  { %4944 = vmatprep.subr.bf16.mxu1 %v4943_v32 }
 0xb53   :  { %v1750_v56 = vpop.f32.mrb[16].mxu1 }
 0xb54   :  { %1848 = vrot.lane.b32.xlu0 %v1750_v56, %s5255_s28  ;;  %v4707_v57 = vpop.f32.mrb[17].mxu1  ;;  %v4381_v56 = vld [vmem:[%s5987_s13] ss:$0 sm:$0xff] }
 0xb57   :  { %v1826_v58 = vpop.f32.mrb[20].mxu0 }
 0xb58   :  { %1850 = vrot.lane.b32.xlu1 %v1826_v58, %s5255_s28  ;;  %v4712_v59 = vpop.f32.mrb[21].mxu0 }
 0xbc6   :  { %v1849_v2 = vpop.permute.xlu0 %1848 }
 0xbc7   :  { %v1860_v34 = vsel %vm1859_vm5, %v1857_v1, %v1849_v2 }
 0xbc8   :  { %4721 = vmatprep.mubr.msk.f32.mxu1 %vm263_vm2, %v1860_v34 }
 0xbca   :  { %v1851_v3 = vpop.permute.xlu1 %1850 }
 0xbcb   :  { %v1861_v4 = vsel %vm1859_vm5, %v1858_v42, %v1851_v3 }
 0xbcc   :  { %4722 = vmatmul.mubr.msk.f32.vlgmr.msra.gmra.mrb[18].mxu1 %vm263_vm2, %v1861_v4 }
 0xbcd   :  { %4946 = vmatpush3.bf16.msra.mxu1 %v4943_v32 }
 0xbce   :  { %4948 = vmatprep.subr.bf16.mxu1 %v4947_v55 }
 0xbd1   :  { %4950 = vmatpush3.bf16.msra.mxu1 %v4947_v55 }
 0xc9f   :  { %v4723_v5 = vpop.f32.mrb[18].mxu1 }
 0xca0   :  { %v1951_v6 = vadd.f32 %v4723_v5, %v4376_v8  ;;  %v1945_v7 = vpop.f32.mrb[19].mxu1 }
 0xca1   :  { %v1946_v9 = vadd.f32 %v4376_v8, %v1945_v7 }
 0xca2   :  { %v1955_v11 = vadd.f32 %v1951_v6, %v5488_v28 }
 0xca3   :  { %v1954_v12 = vadd.f32 %v1946_v9, %v5486_v27  ;;  %v2001_v27 = vld [vmem:[#allocation10] sm:$0xff] }
 0xca4   :  { %v1961_v10 = vsel %vm263_vm2, %v1955_v11, 0.0  ;;  %v4935_v23 = vpack.c.bf16 %v2002_v22, %v2001_v27  ;;  %v2331_v22 = vld [vmem:[#allocation5 + $0x38] sm:$0xff] }
 0xca5   :  { %1962 = vadd.xlane.f32.xlu1 %v1961_v10  ;;  %v1958_v13 = vsel %vm263_vm2, %v1954_v12, 0.0 }
 0xca6   :  { %1959 = vadd.xlane.f32.xlu0 %v1958_v13  ;;  %4936 = vmatprep.subr.bf16.mxu0 %v4935_v23 }
 0xca7   :  { %4938 = vmatpush3.bf16.msra.mxu0 %v4935_v23 }
 0xca8   :  { %4940 = vmatprep.subr.bf16.mxu0 %v4939_v26 }
 0xcab   :  { %4942 = vmatpush3.bf16.msra.mxu0 %v4939_v26  ;;  %v4967_v26 = vpack.c.bf16 %v2417_v25, %v2416_v24 }
 0xd32   :  { %v1963_v39 = vpop.xlane.xlu1 %1962 }
 0xd33   :  { %v1966_v14 = vmul.f32 0.03125, %v1963_v39  ;;  %v1960_v15 = vpop.xlane.xlu0 %1959 }
 0xd34   :  { %v1965_v16 = vmul.f32 0.03125, %v1960_v15  ;;  %v4390_v15 = vld [vmem:[%s6013_s30 + $0x28] sm:$0xff] }
 0xd35   :  { %v1968_v17 = vsub.f32 %v1955_v11, %v1966_v14  ;;  %v4389_v14 = vld [vmem:[%s6013_s30 + $0x20] sm:$0xff] }
 0xd36   :  { %v1967_v18 = vsub.f32 %v1954_v12, %v1965_v16  ;;  %v4951_v16 = vpack.c.bf16 %v4390_v15, %v4389_v14 }
 0xd37   :  { %v1970_v21 = vmul.f32 %v1968_v17, %v1968_v17 }
 0xd38   :  { %v1969_v19 = vmul.f32 %v1967_v18, %v1967_v18  ;;  %4952 = vmatprep.subr.bf16.mxu0 %v4951_v16 }
 0xd39   :  { %v1974_v28 = vsel %vm263_vm2, %v1970_v21, 0.0  ;;  %v4392_v21 = vld [vmem:[%s6013_s30 + $0x38] sm:$0xff] }
 0xd3a   :  { %v1971_v20 = vsel %vm263_vm2, %v1969_v19, 0.0 }
 0xd3b   :  { %1972 = vadd.xlane.f32.xlu0 %v1971_v20  ;;  %v4391_v20 = vld [vmem:[%s6013_s30 + $0x30] sm:$0xff] }
 0xd3c   :  { %v4955_v27 = vpack.c.bf16 %v4392_v21, %v4391_v20 }
 0xd3f   :  { %1975 = vadd.xlane.f32.xlu0 %v1974_v28  ;;  %v2330_v28 = vld [vmem:[#allocation5 + $0x30] sm:$0xff] }
 0xd40   :  { %v4963_v23 = vpack.c.bf16 %v2331_v22, %v2330_v28 }
 0xdc8   :  { %v1973_v33 = vpop.xlane.xlu0 %1972 }
 0xdc9   :  { %v1977_v35 = vmul.f32 0.03125, %v1973_v33 }
 0xdcb   :  { %v1979_v44 = vadd.f32 1e-05, %v1977_v35 }
 0xdcc   :  { %v1976_v36 = vpop.xlane.xlu0 %1975 }
 0xdcd   :  { %5053 = vrsqrt.f32 %v1979_v44  ;;  %v1978_v37 = vmul.f32 0.03125, %v1976_v36 }
 0xdcf   :  { %v1980_v40 = vadd.f32 1e-05, %v1978_v37  ;;  %v4387_v37 = vld [vmem:[%s5992_s18] ss:$0 sm:$0xff] }
 0xdd1   :  { %5055 = vrsqrt.f32 %v1980_v40 }
 0xdd7   :  { %v5054_v41 = vpop.eup %5053 }
 0xdd8   :  { %v1983_v46 = vmul.f32 %v5054_v41, %v1967_v18  ;;  %v2329_v18 = vld [vmem:[#allocation5 + $0x28] sm:$0xff] }
 0xdda   :  { %v1991_v48 = vmul.f32 %v4379_v43, %v1983_v46  ;;  %v4388_v46 = vld [vmem:[%s5993_s19] ss:$0 sm:$0xff] }
 0xddb   :  { %v5056_v49 = vpop.eup %5055 }
 0xddc   :  { %v1984_v50 = vmul.f32 %v5056_v49, %v1968_v17  ;;  %v1999_v51 = vadd.f32 %v4380_v47, %v1991_v48  ;;  %v2328_v17 = vld [vmem:[#allocation5 + $0x20] sm:$0xff]  ;;  %v2418_v49 = vld [vmem:[#allocation7 + $0x30] sm:$0xff] }
 0xddd   :  { %v4959_v19 = vpack.c.bf16 %v2329_v18, %v2328_v17 }
 0xdde   :  { %v1992_v52 = vmul.f32 %v4379_v43, %v1984_v50  ;;  %4732 = vmatprep.mubr.msk.f32.mxu0 %vm263_vm2, %v1999_v51  ;;  %v2419_v50 = vld [vmem:[#allocation7 + $0x38] sm:$0xff] }
 0xddf   :  { %4960 = vmatprep.subr.bf16.mxu1 %v4959_v19 }
 0xde0   :  { %v2000_v53 = vadd.f32 %v4380_v47, %v1992_v52 }
 0xde2   :  { %4733 = vmatmul.mubr.msk.f32.vlgmr.msra.gmra.mrb[22].mxu0 %vm263_vm2, %v2000_v53 }
 0xde3   :  { %4954 = vmatpush3.bf16.msra.mxu0 %v4951_v16 }
 0xde4   :  { %4956 = vmatprep.subr.bf16.mxu0 %v4955_v27 }
 0xde7   :  { %4958 = vmatpush3.bf16.msra.mxu0 %v4955_v27 }
 0xde8   :  { %4968 = vmatprep.subr.bf16.mxu0 %v4967_v26 }
 0xeb5   :  { %v4734_v57 = vpop.f32.mrb[22].mxu0 }
 0xeb6   :  { %v2090_v58 = vadd.f32 %v4734_v57, %v4381_v56  ;;  %v2084_v59 = vpop.f32.mrb[23].mxu0 }
 0xeb7   :  { %v2085_v60 = vadd.f32 %v4381_v56, %v2084_v59  ;;  %v4394_v56 = vld [vmem:[%s6016_s8 + $0x1] ss:$0 sm:$0xff] }
 0xeb8   :  { %v2094_v62 = vmax.f32 %v2090_v58, 0.0 }
 0xeb9   :  { %v2093_v61 = vmax.f32 %v2085_v60, 0.0 }
 0xebb   :  { %4743 = vmatprep.mubr.msk.f32.mxu1 %vm263_vm2, %v2093_v61 }
 0xebc   :  { %4744 = vmatmul.mubr.msk.f32.vlgmr.msra.gmra.mrb[20].mxu1 %vm263_vm2, %v2094_v62 }
 0xebd   :  { %4962 = vmatpush3.bf16.msra.mxu1 %v4959_v19 }
 0xebe   :  { %4964 = vmatprep.subr.bf16.mxu1 %v4963_v23 }
 0xec1   :  { %4966 = vmatpush3.bf16.msra.mxu1 %v4963_v23 }
 0xec2   :  { %4779 = vmatprep.subr.mxu1 %v5249_v30 }
 0xf8f   :  { %v4745_v0 = vpop.f32.mrb[20].mxu1 }
 0xf90   :  { %v2184_v1 = vadd.f32 %v4745_v0, %v4384_v63  ;;  %v2178_v2 = vpop.f32.mrb[21].mxu1 }
 0xf91   :  { %v2179_v34 = vadd.f32 %v4384_v63, %v2178_v2  ;;  %v4402_v63 = vld [vmem:[%s5983_s9 + $0x1] ss:$0 sm:$0xff] }
 0xf92   :  { %v2188_v38 = vadd.f32 %v2184_v1, %v2000_v53  ;;  %v4971_v53 = vpack.c.bf16 %v2419_v50, %v2418_v49 }
 0xf93   :  { %v2187_v42 = vadd.f32 %v2179_v34, %v1999_v51 }
 0xf94   :  { %v2194_v3 = vsel %vm263_vm2, %v2188_v38, 0.0 }
 0xf95   :  { %2195 = vadd.xlane.f32.xlu1 %v2194_v3  ;;  %v2191_v4 = vsel %vm263_vm2, %v2187_v42, 0.0 }
 0xf96   :  { %2192 = vadd.xlane.f32.xlu0 %v2191_v4 }
0x1022   :  { %v2196_v8 = vpop.xlane.xlu1 %2195 }
0x1023   :  { %v2198_v5 = vmul.f32 0.03125, %v2196_v8  ;;  %v2193_v6 = vpop.xlane.xlu0 %2192 }
0x1024   :  { %v2197_v7 = vmul.f32 0.03125, %v2193_v6 }
0x1025   :  { %v2200_v9 = vsub.f32 %v2188_v38, %v2198_v5 }
0x1026   :  { %v2199_v11 = vsub.f32 %v2187_v42, %v2197_v7 }
0x1027   :  { %v2202_v12 = vmul.f32 %v2200_v9, %v2200_v9 }
0x1028   :  { %v2201_v10 = vmul.f32 %v2199_v11, %v2199_v11 }
0x1029   :  { %v2206_v13 = vsel %vm263_vm2, %v2202_v12, 0.0 }
0x102a   :  { %2207 = vadd.xlane.f32.xlu1 %v2206_v13  ;;  %v2203_v39 = vsel %vm263_vm2, %v2201_v10, 0.0 }
0x102b   :  { %2204 = vadd.xlane.f32.xlu0 %v2203_v39 }
0x10b7   :  { %v2208_v29 = vpop.xlane.xlu1 %2207 }
0x10b8   :  { %v2210_v31 = vmul.f32 0.03125, %v2208_v29  ;;  %v2205_v32 = vpop.xlane.xlu0 %2204 }
0x10b9   :  { %v2209_v33 = vmul.f32 0.03125, %v2205_v32 }
0x10ba   :  { %v2212_v35 = vadd.f32 1e-05, %v2210_v31 }
0x10bb   :  { %v2211_v44 = vadd.f32 1e-05, %v2209_v33 }
0x10bc   :  { %5057 = vrsqrt.f32 %v2212_v35 }
0x10bd   :  { %5059 = vrsqrt.f32 %v2211_v44 }
0x10c6   :  { %v5058_v36 = vpop.eup %5057 }
0x10c7   :  { %v5060_v40 = vpop.eup %5059  ;;  %v2216_v41 = vmul.f32 %v5058_v36, %v2200_v9 }
0x10c8   :  { %v2215_v43 = vmul.f32 %v5060_v40, %v2199_v11 }
0x10c9   :  { %v2224_v47 = vmul.f32 %v4387_v37, %v2216_v41 }
0x10ca   :  { %v2223_v48 = vmul.f32 %v4387_v37, %v2215_v43 }
0x10cb   :  { %v5729_v52 = vadd.f32 %v4388_v46, %v2224_v47 }
0x10cc   :  { %v5727_v51 = vadd.f32 %v4388_v46, %v2223_v48 }
0x10ce   :  { %4754 = vmatprep.mubr.msk.f32.mxu0 %vm263_vm2, %v5727_v51  ;;  %4765 = vmatprep.mubr.msk.f32.mxu1 %vm263_vm2, %v5727_v51 }
0x10cf   :  { %4755 = vmatmul.mubr.msk.f32.vlgmr.msra.gmra.mrb[24].mxu0 %vm263_vm2, %v5729_v52  ;;  %4766 = vmatmul.mubr.msk.f32.vlgmr.msra.gmra.mrb[22].mxu1 %vm263_vm2, %v5729_v52 }
0x10d0   :  { %4970 = vmatpush3.bf16.msra.mxu0 %v4967_v26  ;;  %4776 = vmatprep.mubr.msk.f32.mxu0 %vm263_vm2, %v5727_v51 }
0x10d1   :  { %4972 = vmatprep.subr.bf16.mxu0 %v4971_v53  ;;  %4781 = vmatprep.mubr.msk.f32.mxu1 %vm5250_vm3, %v5249_v30 }
0x10d4   :  { %4974 = vmatpush3.bf16.msra.mxu0 %v4971_v53 }
0x10d5   :  { %4784 = vmatprep.subr.mxu0 %v5249_v30 }
0x10d7   :  { %4777 = vmatmul.mubr.msk.f32.vlgmr.msra.gmra.mrb[26].mxu0 %vm263_vm2, %v5729_v52 }
0x10d8   :  { %4786 = vmatprep.mubr.msk.f32.mxu0 %vm5250_vm3, %v5249_v30 }
0x11a2   :  { %v4756_v54 = vpop.f32.mrb[24].mxu0  ;;  %v4767_v55 = vpop.f32.mrb[22].mxu1 }
0x11a3   :  { %v5754_v57 = vadd.f32 %v4767_v55, %v4398_v45  ;;  %v2318_v58 = vpop.f32.mrb[25].mxu0  ;;  %v2406_v59 = vpop.f32.mrb[23].mxu1  ;;  %v5760_v61 = vadd.f32 %v4756_v54, %v4394_v56 }
0x11a4   :  { %v5756_v60 = vadd.f32 %v4398_v45, %v2406_v59  ;;  %v5765_v62 = vadd.f32 %v4394_v56, %v2318_v58 }
0x11a5   :  { %4785 = vmatpush3.xpose.msk.msra.mxu0 %vm517_vm4, %v5754_v57 }
0x11a6   :  { %4780 = vmatpush3.xpose.msk.msra.mxu1 %vm517_vm4, %v5756_v60  ;;  %4794 = vmatprep.subr.mxu0 %v5249_v30 }
0x11a7   :  { %4789 = vmatprep.subr.mxu1 %v5249_v30 }
0x11a8   :  { %4787 = vmatmul.mubr.msk.f32.vlgmr.msra.gmra.mrb[28].mxu0 %vm517_vm4, %v5760_v61 }
0x11a9   :  { %4782 = vmatmul.mubr.msk.f32.vlgmr.msra.gmra.mrb[24].mxu1 %vm517_vm4, %v5765_v62  ;;  %4796 = vmatprep.mubr.msk.f32.mxu0 %vm5250_vm3, %v5249_v30 }
0x11aa   :  { %v4778_v0 = vpop.f32.mrb[26].mxu0  ;;  %4791 = vmatprep.mubr.msk.f32.mxu1 %vm5250_vm3, %v5249_v30 }
0x11ab   :  { %v5779_v1 = vadd.f32 %v4778_v0, %v4402_v63  ;;  %v2494_v2 = vpop.f32.mrb[27].mxu0 }
0x11ac   :  { %v5781_v34 = vadd.f32 %v4402_v63, %v2494_v2 }
0x11ad   :  { %4795 = vmatpush3.msra.mxu0 %v5779_v1 }
0x11ae   :  { %4790 = vmatpush3.msra.mxu1 %v5781_v34  ;;  %4804 = vmatprep.subr.mxu0 %v5249_v30 }
0x11af   :  { %4799 = vmatprep.subr.mxu1 %v5249_v30 }
0x127b   :  { %v2651_v38 = vpop.f32.mrb[28].mxu0 }
0x127c   :  { %v2575_v42 = vpop.f32.mrb[24].mxu1  ;;  %v4788_v3 = vpop.f32.mrb[29].mxu0  ;;  %v2658_v4 = vsel %vm517_vm4, %v2651_v38, -inf }
0x127d   :  { %2659 = vmax.xlane.f32.xlu1 %v2658_v4  ;;  %v4783_v8 = vpop.f32.mrb[25].mxu1  ;;  %v2655_v5 = vsel %vm517_vm4, %v2575_v42, -inf }
0x127e   :  { %2656 = vmax.xlane.f32.xlu0 %v2655_v5 }
0x130a   :  { %v2660_v6 = vpop.xlane.xlu1 %2659 }
0x130b   :  { %v2662_v7 = vsub.f32 %v2651_v38, %v2660_v6  ;;  %v2657_v9 = vpop.xlane.xlu0 %2656 }
0x130c   :  { %v2661_v11 = vsub.f32 %v2575_v42, %v2657_v9 }
0x130d   :  { %v2665_v12 = vmul.f32 1.442695, %v2662_v7 }
0x130e   :  { %v2663_v10 = vmul.f32 1.442695, %v2661_v11 }
0x130f   :  { %5061 = vpow2.f32 %v2665_v12 }
0x1310   :  { %5063 = vpow2.f32 %v2663_v10 }
0x1319   :  { %v5062_v13 = vpop.eup %5061 }
0x131a   :  { %v5064_v39 = vpop.eup %5063  ;;  %v2670_v14 = vsel %vm517_vm4, %v5062_v13, 0.0 }
0x131b   :  { %2671 = vadd.xlane.f32.xlu1 %v2670_v14  ;;  %v2667_v15 = vsel %vm517_vm4, %v5064_v39, 0.0 }
0x131c   :  { %2668 = vadd.xlane.f32.xlu0 %v2667_v15 }
0x132c   :  { %2903 = vrot.lane.b32.xlu1 %v5754_v57, %s5251_s14 }
0x1330   :  { %2823 = vrot.lane.b32.xlu1 %v5765_v62, %s5251_s14 }
0x1332   :  { %2825 = vrot.lane.b32.xlu0 %v5756_v60, %s5251_s14 }
0x1334   :  { %2901 = vrot.lane.b32.xlu1 %v5760_v61, %s5251_s14 }
0x13a8   :  { %v2672_v16 = vpop.xlane.xlu1 %2671 }
0x13a9   :  { %5065 = vrcp.f32 %v2672_v16  ;;  %v2669_v17 = vpop.xlane.xlu0 %2668 }
0x13aa   :  { %5067 = vrcp.f32 %v2669_v17 }
0x13ac   :  { %v2904_v18 = vpop.permute.xlu1 %2903 }
0x13ad   :  { %v2826_v22 = vpop.permute.xlu0 %2825 }
0x13b0   :  { %v2824_v20 = vpop.permute.xlu1 %2823 }
0x13b3   :  { %v5066_v19 = vpop.eup %5065 }
0x13b4   :  { %v5068_v21 = vpop.eup %5067  ;;  %v2676_v28 = vmul.f32 %v5066_v19, %v5062_v13  ;;  %v2902_v23 = vpop.permute.xlu1 %2901 }
0x13b5   :  { %v2675_v27 = vmul.f32 %v5068_v21, %v5064_v39 }
0x13b6   :  { %4797 = vmatmul.mubr.msk.f32.vlgmr.msra.gmra.mrb[30].mxu0 %vm517_vm4, %v2676_v28 }
0x13b7   :  { %4805 = vmatpush3.xpose.msk.msra.mxu0 %vm517_vm4, %v2904_v18  ;;  %4792 = vmatmul.mubr.msk.f32.vlgmr.msra.gmra.mrb[26].mxu1 %vm517_vm4, %v2675_v27 }
0x13b8   :  { %4800 = vmatpush3.xpose.msk.msra.mxu1 %vm517_vm4, %v2826_v22  ;;  %4806 = vmatprep.mubr.msk.f32.mxu0 %vm5250_vm3, %v5249_v30 }
0x13b9   :  { %4801 = vmatprep.mubr.msk.f32.mxu1 %vm5250_vm3, %v5249_v30  ;;  %4814 = vmatprep.subr.mxu0 %v5249_v30 }
0x13ba   :  { %4807 = vmatmul.mubr.msk.f32.vlgmr.msra.gmra.mrb[32].mxu0 %vm517_vm4, %v2902_v23  ;;  %4809 = vmatprep.subr.mxu1 %v5249_v30 }
0x13bb   :  { %4802 = vmatmul.mubr.msk.f32.vlgmr.msra.gmra.mrb[28].mxu1 %vm517_vm4, %v2824_v20  ;;  %4816 = vmatprep.mubr.msk.f32.mxu0 %vm5250_vm3, %v5249_v30 }
0x13bc   :  { %4811 = vmatprep.mubr.msk.f32.mxu1 %vm5250_vm3, %v5249_v30 }
0x1489   :  { %v5815_v24 = vpop.f32.mrb[30].mxu0 }
0x148a   :  { %v5817_v25 = vpop.f32.mrb[26].mxu1  ;;  %v4798_v26 = vpop.f32.mrb[31].mxu0 }
0x148b   :  { %v4793_v29 = vpop.f32.mrb[27].mxu1 }
0x148d   :  { %v2975_v31 = vpop.f32.mrb[32].mxu0 }
0x148e   :  { %v2897_v32 = vpop.f32.mrb[28].mxu1  ;;  %v4808_v33 = vpop.f32.mrb[33].mxu0  ;;  %v2982_v35 = vsel %vm517_vm4, %v2975_v31, -inf }
0x148f   :  { %2983 = vmax.xlane.f32.xlu1 %v2982_v35  ;;  %v4803_v44 = vpop.f32.mrb[29].mxu1  ;;  %v2979_v36 = vsel %vm517_vm4, %v2897_v32, -inf }
0x1490   :  { %2980 = vmax.xlane.f32.xlu0 %v2979_v36 }
0x14a0   :  { %3079 = vrot.lane.b32.xlu1 %v5779_v1, %s5251_s14 }
0x14a4   :  { %3157 = vrot.lane.b32.xlu1 %v5756_v60, %s5252_s24 }
0x14a6   :  { %3002 = vrot.lane.b32.xlu0 %v5781_v34, %s5251_s14 }
0x14a8   :  { %3235 = vrot.lane.b32.xlu1 %v5754_v57, %s5252_s24 }
0x14ac   :  { %3233 = vrot.lane.b32.xlu1 %v5760_v61, %s5252_s24 }
0x151c   :  { %v2984_v37 = vpop.xlane.xlu1 %2983 }
0x151d   :  { %v2986_v40 = vsub.f32 %v2975_v31, %v2984_v37  ;;  %v2981_v41 = vpop.xlane.xlu0 %2980 }
0x151e   :  { %v2985_v43 = vsub.f32 %v2897_v32, %v2981_v41 }
0x151f   :  { %v2989_v46 = vmul.f32 1.442695, %v2986_v40 }
0x1520   :  { %v2987_v47 = vmul.f32 1.442695, %v2985_v43  ;;  %v3080_v48 = vpop.permute.xlu1 %3079 }
0x1521   :  { %5069 = vpow2.f32 %v2989_v46  ;;  %4815 = vmatpush3.msra.mxu0 %v3080_v48  ;;  %v3003_v49 = vpop.permute.xlu0 %3002 }
0x1522   :  { %4810 = vmatpush3.msra.mxu1 %v3003_v49  ;;  %4824 = vmatprep.subr.mxu0 %v5249_v30  ;;  %5071 = vpow2.f32 %v2987_v47 }
0x1523   :  { %4819 = vmatprep.subr.mxu1 %v5249_v30 }
0x1524   :  { %v3158_v58 = vpop.permute.xlu1 %3157 }
0x1528   :  { %v3236_v63 = vpop.permute.xlu1 %3235 }
0x152b   :  { %v5070_v50 = vpop.eup %5069 }
0x152c   :  { %v2994_v53 = vsel %vm517_vm4, %v5070_v50, 0.0  ;;  %v5072_v45 = vpop.eup %5071  ;;  %v3234_v42 = vpop.permute.xlu1 %3233 }
0x152d   :  { %2995 = vadd.xlane.f32.xlu0 %v2994_v53  ;;  %v2991_v54 = vsel %vm517_vm4, %v5072_v45, 0.0 }
0x1531   :  { %2992 = vadd.xlane.f32.xlu0 %v2991_v54 }
0x1547   :  { %3155 = vrot.lane.b32.xlu0 %v5765_v62, %s5252_s24 }
0x15ba   :  { %v2996_v55 = vpop.xlane.xlu0 %2995 }
0x15bb   :  { %5073 = vrcp.f32 %v2996_v55 }
0x15be   :  { %v2993_v56 = vpop.xlane.xlu0 %2992 }
0x15bf   :  { %5075 = vrcp.f32 %v2993_v56 }
0x15c2   :  { %v3156_v3 = vpop.permute.xlu0 %3155 }
0x15c5   :  { %v5074_v59 = vpop.eup %5073 }
0x15c6   :  { %v3000_v0 = vmul.f32 %v5074_v59, %v5070_v50 }
0x15c8   :  { %4817 = vmatmul.mubr.msk.f32.vlgmr.msra.gmra.mrb[34].mxu0 %vm517_vm4, %v3000_v0 }
0x15c9   :  { %v5076_v2 = vpop.eup %5075  ;;  %4825 = vmatpush3.xpose.msk.msra.mxu0 %vm517_vm4, %v3236_v63  ;;  %4826 = vmatprep.mubr.msk.f32.mxu0 %vm5250_vm3, %v5249_v30 }
0x15ca   :  { %v2999_v38 = vmul.f32 %v5076_v2, %v5072_v45  ;;  %4834 = vmatprep.subr.mxu0 %v5249_v30 }
0x15cc   :  { %4812 = vmatmul.mubr.msk.f32.vlgmr.msra.gmra.mrb[30].mxu1 %vm517_vm4, %v2999_v38  ;;  %4827 = vmatmul.mubr.msk.f32.vlgmr.msra.gmra.mrb[36].mxu0 %vm517_vm4, %v3234_v42 }
0x15cd   :  { %4820 = vmatpush3.xpose.msk.msra.mxu1 %vm517_vm4, %v3158_v58  ;;  %4821 = vmatprep.mubr.msk.f32.mxu1 %vm5250_vm3, %v5249_v30 }
0x15ce   :  { %4829 = vmatprep.subr.mxu1 %v5249_v30  ;;  %4836 = vmatprep.mubr.msk.f32.mxu0 %vm5250_vm3, %v5249_v30 }
0x15d0   :  { %4822 = vmatmul.mubr.msk.f32.vlgmr.msra.gmra.mrb[32].mxu1 %vm517_vm4, %v3156_v3 }
0x15d1   :  { %4831 = vmatprep.mubr.msk.f32.mxu1 %vm5250_vm3, %v5249_v30 }
0x169b   :  { %v5853_v4 = vpop.f32.mrb[34].mxu0 }
0x169c   :  { %v4818_v8 = vpop.f32.mrb[35].mxu0 }
0x169f   :  { %v5855_v5 = vpop.f32.mrb[30].mxu1  ;;  %v3307_v6 = vpop.f32.mrb[36].mxu0 }
0x16a0   :  { %v4813_v7 = vpop.f32.mrb[31].mxu1  ;;  %v4828_v9 = vpop.f32.mrb[37].mxu0  ;;  %v3314_v11 = vsel %vm517_vm4, %v3307_v6, -inf }
0x16a1   :  { %3315 = vmax.xlane.f32.xlu1 %v3314_v11  ;;  %v3849_v9 = vld [vmem:[#allocation8 + $0x38] sm:$0xff] }
0x16a3   :  { %v3229_v12 = vpop.f32.mrb[32].mxu1 }
0x16a4   :  { %v4823_v10 = vpop.f32.mrb[33].mxu1  ;;  %v3311_v13 = vsel %vm517_vm4, %v3229_v12, -inf }
0x16a5   :  { %3312 = vmax.xlane.f32.xlu0 %v3311_v13 }
0x16b2   :  { %3409 = vrot.lane.b32.xlu1 %v5779_v1, %s5252_s24 }
0x16b6   :  { %3487 = vrot.lane.b32.xlu1 %v5756_v60, %s5253_s6 }
0x16ba   :  { %3565 = vrot.lane.b32.xlu1 %v5754_v57, %s5253_s6 }
0x16bb   :  { %3333 = vrot.lane.b32.xlu0 %v5781_v34, %s5252_s24 }
0x16be   :  { %3563 = vrot.lane.b32.xlu1 %v5760_v61, %s5253_s6 }
0x172e   :  { %v3316_v39 = vpop.xlane.xlu1 %3315 }
0x172f   :  { %v3318_v14 = vsub.f32 %v3307_v6, %v3316_v39  ;;  %v3847_v6 = vld [vmem:[#allocation8 + $0x28] sm:$0xff] }
0x1731   :  { %v3321_v15 = vmul.f32 1.442695, %v3318_v14 }
0x1732   :  { %v3410_v16 = vpop.permute.xlu1 %3409  ;;  %v3313_v17 = vpop.xlane.xlu0 %3312 }
0x1733   :  { %5077 = vpow2.f32 %v3321_v15  ;;  %v3317_v18 = vsub.f32 %v3229_v12, %v3313_v17  ;;  %4835 = vmatpush3.msra.mxu0 %v3410_v16 }
0x1734   :  { %4844 = vmatprep.subr.mxu0 %v5249_v30 }
0x1735   :  { %v3319_v60 = vmul.f32 1.442695, %v3317_v18 }
0x1736   :  { %v3334_v19 = vpop.permute.xlu0 %3333  ;;  %v3488_v22 = vpop.permute.xlu1 %3487 }
0x1737   :  { %5079 = vpow2.f32 %v3319_v60  ;;  %4830 = vmatpush3.msra.mxu1 %v3334_v19 }
0x1738   :  { %4839 = vmatprep.subr.mxu1 %v5249_v30 }
0x173a   :  { %v3566_v26 = vpop.permute.xlu1 %3565 }
0x173d   :  { %v5078_v57 = vpop.eup %5077 }
0x173e   :  { %v3326_v20 = vsel %vm517_vm4, %v5078_v57, 0.0 }
0x173f   :  { %3327 = vadd.xlane.f32.xlu0 %v3326_v20 }
0x1741   :  { %v5080_v61 = vpop.eup %5079 }
0x1742   :  { %v3323_v21 = vsel %vm517_vm4, %v5080_v61, 0.0 }
0x1743   :  { %3324 = vadd.xlane.f32.xlu0 %v3323_v21 }
0x1759   :  { %3485 = vrot.lane.b32.xlu0 %v5765_v62, %s5253_s6  ;;  %v3564_v62 = vpop.permute.xlu1 %3563 }
0x17cc   :  { %v3328_v28 = vpop.xlane.xlu0 %3327 }
0x17cd   :  { %5081 = vrcp.f32 %v3328_v28 }
0x17d0   :  { %v3325_v27 = vpop.xlane.xlu0 %3324 }
0x17d1   :  { %5083 = vrcp.f32 %v3325_v27 }
0x17d4   :  { %v3486_v33 = vpop.permute.xlu0 %3485 }
0x17d7   :  { %v5082_v23 = vpop.eup %5081 }
0x17d8   :  { %v3332_v29 = vmul.f32 %v5082_v23, %v5078_v57 }
0x17da   :  { %4837 = vmatmul.mubr.msk.f32.vlgmr.msra.gmra.mrb[38].mxu0 %vm517_vm4, %v3332_v29 }
0x17db   :  { %v5084_v31 = vpop.eup %5083  ;;  %4845 = vmatpush3.xpose.msk.msra.mxu0 %vm517_vm4, %v3566_v26  ;;  %4846 = vmatprep.mubr.msk.f32.mxu0 %vm5250_vm3, %v5249_v30 }
0x17dc   :  { %v3331_v32 = vmul.f32 %v5084_v31, %v5080_v61  ;;  %4854 = vmatprep.subr.mxu0 %v5249_v30 }
0x17de   :  { %4832 = vmatmul.mubr.msk.f32.vlgmr.msra.gmra.mrb[34].mxu1 %vm517_vm4, %v3331_v32  ;;  %4847 = vmatmul.mubr.msk.f32.vlgmr.msra.gmra.mrb[40].mxu0 %vm517_vm4, %v3564_v62 }
0x17df   :  { %4840 = vmatpush3.xpose.msk.msra.mxu1 %vm517_vm4, %v3488_v22  ;;  %4841 = vmatprep.mubr.msk.f32.mxu1 %vm5250_vm3, %v5249_v30 }
0x17e0   :  { %4849 = vmatprep.subr.mxu1 %v5249_v30  ;;  %4856 = vmatprep.mubr.msk.f32.mxu0 %vm5250_vm3, %v5249_v30 }
0x17e2   :  { %4842 = vmatmul.mubr.msk.f32.vlgmr.msra.gmra.mrb[36].mxu1 %vm517_vm4, %v3486_v33 }
0x17e3   :  { %4851 = vmatprep.mubr.msk.f32.mxu1 %vm5250_vm3, %v5249_v30 }
0x18ad   :  { %v3481_v35 = vpop.f32.mrb[38].mxu0 }
0x18ae   :  { %v4838_v44 = vpop.f32.mrb[39].mxu0 }
0x18b1   :  { %v3405_v36 = vpop.f32.mrb[34].mxu1  ;;  %v3637_v37 = vpop.f32.mrb[40].mxu0 }
0x18b2   :  { %v4833_v40 = vpop.f32.mrb[35].mxu1  ;;  %v4848_v41 = vpop.f32.mrb[41].mxu0  ;;  %v3644_v43 = vsel %vm517_vm4, %v3637_v37, -inf }
0x18b3   :  { %3645 = vmax.xlane.f32.xlu1 %v3644_v43 }
0x18b5   :  { %v3559_v46 = vpop.f32.mrb[36].mxu1 }
0x18b6   :  { %v4843_v47 = vpop.f32.mrb[37].mxu1  ;;  %v3641_v48 = vsel %vm517_vm4, %v3559_v46, -inf }
0x18b7   :  { %3642 = vmax.xlane.f32.xlu0 %v3641_v48  ;;  %v3990_v48 = vld [vmem:[#allocation10 + $0x30] sm:$0xff] }
0x18c4   :  { %3739 = vrot.lane.b32.xlu1 %v5779_v1, %s5253_s6 }
0x18c8   :  { %3817 = vrot.lane.b32.xlu1 %v5855_v5, %s5243_s2  ;;  %v3846_v5 = vld [vmem:[#allocation8 + $0x20] sm:$0xff] }
0x18c9   :  { %v4975_v7 = vpack.c.bf16 %v3847_v6, %v3846_v5 }
0x18cc   :  { %3819 = vrot.lane.b32.xlu1 %v5853_v4, %s5243_s2 }
0x18d0   :  { %3827 = vrot.lane.b32.xlu1 %v3481_v35, %s5254_s0 }
0x1940   :  { %v3646_v49 = vpop.xlane.xlu1 %3645 }
0x1941   :  { %v3648_v50 = vsub.f32 %v3637_v37, %v3646_v49  ;;  %v3991_v49 = vld [vmem:[#allocation10 + $0x38] sm:$0xff] }
0x1943   :  { %v3651_v53 = vmul.f32 1.442695, %v3648_v50  ;;  %v4987_v50 = vpack.c.bf16 %v3991_v49, %v3990_v48  ;;  %v4447_v49 = vld [vmem:[%s5992_s18 + $0x1] ss:$0 sm:$0xff] }
0x1944   :  { %v3740_v45 = vpop.permute.xlu1 %3739  ;;  %v3643_v54 = vpop.xlane.xlu0 %3642 }
0x1945   :  { %5085 = vpow2.f32 %v3651_v53  ;;  %v3647_v55 = vsub.f32 %v3559_v46, %v3643_v54  ;;  %4855 = vmatpush3.msra.mxu0 %v3740_v45  ;;  %v3989_v46 = vld [vmem:[#allocation10 + $0x28] sm:$0xff]  ;;  %v4084_v53 = vld [vmem:[#allocation11 + $0x20] sm:$0xff] }
0x1946   :  { %v4085_v45 = vld [vmem:[#allocation11 + $0x28] sm:$0xff] }
0x1947   :  { %v3649_v56 = vmul.f32 1.442695, %v3647_v55  ;;  %v4991_v54 = vpack.c.bf16 %v4085_v45, %v4084_v53  ;;  %v4448_v45 = vld [vmem:[%s5993_s19 + $0x1] ss:$0 sm:$0xff] }
0x1948   :  { %v3818_v14 = vpop.permute.xlu1 %3817 }
0x1949   :  { %5087 = vpow2.f32 %v3649_v56  ;;  %v3839_v18 = vsel %vm517_vm4, %v5817_v25, %v3818_v14  ;;  %v4430_v25 = vld [vmem:[%s5985_s11 + $0x1] ss:$0 sm:$0xff] }
0x194c   :  { %v3820_v15 = vpop.permute.xlu1 %3819 }
0x194d   :  { %v3840_v19 = vsel %vm517_vm4, %v5815_v24, %v3820_v15 }
0x194f   :  { %v5086_v58 = vpop.eup %5085 }
0x1950   :  { %v3656_v1 = vsel %vm517_vm4, %v5086_v58, 0.0  ;;  %v3828_v16 = vpop.permute.xlu1 %3827 }
0x1951   :  { %3657 = vadd.xlane.f32.xlu0 %v3656_v1  ;;  %v3842_v61 = vsel %vm1856_vm6, %v3840_v19, %v3828_v16 }
0x1953   :  { %v5088_v59 = vpop.eup %5087 }
0x1954   :  { %v3653_v63 = vsel %vm517_vm4, %v5088_v59, 0.0 }
0x1955   :  { %3654 = vadd.xlane.f32.xlu0 %v3653_v63 }
0x196b   :  { %3663 = vrot.lane.b32.xlu0 %v5781_v34, %s5253_s6  ;;  %v3848_v34 = vld [vmem:[#allocation8 + $0x30] sm:$0xff] }
0x196c   :  { %v4979_v11 = vpack.c.bf16 %v3849_v9, %v3848_v34  ;;  %v4086_v34 = vld [vmem:[#allocation11 + $0x30] sm:$0xff]  ;;  %v4087_v9 = vld [vmem:[#allocation11 + $0x38] sm:$0xff] }
0x196f   :  { %3825 = vrot.lane.b32.xlu0 %v3405_v36, %s5254_s0 }
0x19de   :  { %v3658_v0 = vpop.xlane.xlu0 %3657 }
0x19df   :  { %5089 = vrcp.f32 %v3658_v0 }
0x19e2   :  { %v3655_v2 = vpop.xlane.xlu0 %3654 }
0x19e3   :  { %5091 = vrcp.f32 %v3655_v2  ;;  %v4435_v2 = vld [vmem:[%s5990_s16 + $0x1] ss:$0 sm:$0xff] }
0x19e6   :  { %v3664_v38 = vpop.permute.xlu0 %3663 }
0x19e7   :  { %4850 = vmatpush3.msra.mxu1 %v3664_v38 }
0x19e8   :  { %4976 = vmatprep.subr.bf16.mxu1 %v4975_v7 }
0x19e9   :  { %v5090_v42 = vpop.eup %5089 }
0x19ea   :  { %v3662_v3 = vmul.f32 %v5090_v42, %v5086_v58  ;;  %v3826_v17 = vpop.permute.xlu0 %3825  ;;  %v4436_v42 = vld [vmem:[%s5991_s17 + $0x1] ss:$0 sm:$0xff] }
0x19eb   :  { %v3841_v57 = vsel %vm1856_vm6, %v3839_v18, %v3826_v17 }
0x19ec   :  { %4857 = vmatmul.mubr.msk.f32.vlgmr.msra.gmra.mrb[42].mxu0 %vm517_vm4, %v3662_v3 }
0x19ed   :  { %v5092_v4 = vpop.eup %5091 }
0x19ee   :  { %v3661_v8 = vmul.f32 %v5092_v4, %v5088_v59 }
0x19f0   :  { %4852 = vmatmul.mubr.msk.f32.vlgmr.msra.gmra.mrb[38].mxu1 %vm517_vm4, %v3661_v8 }
0x19f1   :  { %4978 = vmatpush3.bf16.msra.mxu1 %v4975_v7 }
0x19f2   :  { %4980 = vmatprep.subr.bf16.mxu1 %v4979_v11 }
0x19f5   :  { %4982 = vmatpush3.bf16.msra.mxu1 %v4979_v11  ;;  %v4995_v11 = vpack.c.bf16 %v4087_v9, %v4086_v34 }
0x19f6   :  { %4992 = vmatprep.subr.bf16.mxu1 %v4991_v54 }
0x1abf   :  { %v3811_v12 = vpop.f32.mrb[42].mxu0 }
0x1ac0   :  { %3835 = vrot.lane.b32.xlu1 %v3811_v12, %s5255_s28  ;;  %v4858_v10 = vpop.f32.mrb[43].mxu0  ;;  %v4438_v12 = vld [vmem:[%s5987_s13 + $0x1] ss:$0 sm:$0xff] }
0x1ac3   :  { %v3735_v13 = vpop.f32.mrb[38].mxu1 }
0x1ac4   :  { %3833 = vrot.lane.b32.xlu0 %v3735_v13, %s5255_s28  ;;  %v4853_v39 = vpop.f32.mrb[39].mxu1 }
0x1b32   :  { %v3836_v60 = vpop.permute.xlu1 %3835 }
0x1b33   :  { %v3844_v28 = vsel %vm1859_vm5, %v3842_v61, %v3836_v60 }
0x1b36   :  { %v3834_v20 = vpop.permute.xlu0 %3833 }
0x1b37   :  { %v3843_v21 = vsel %vm1859_vm5, %v3841_v57, %v3834_v20 }
0x1b38   :  { %4867 = vmatprep.mubr.msk.f32.mxu1 %vm263_vm2, %v3843_v21 }
0x1b39   :  { %4868 = vmatmul.mubr.msk.f32.vlgmr.msra.gmra.mrb[40].mxu1 %vm263_vm2, %v3844_v28 }
0x1b3a   :  { %4994 = vmatpush3.bf16.msra.mxu1 %v4991_v54 }
0x1b3b   :  { %4996 = vmatprep.subr.bf16.mxu1 %v4995_v11 }
0x1b3e   :  { %4998 = vmatpush3.bf16.msra.mxu1 %v4995_v11 }
0x1c0c   :  { %v4869_v27 = vpop.f32.mrb[40].mxu1 }
0x1c0d   :  { %v3936_v22 = vadd.f32 %v4869_v27, %v4430_v25  ;;  %v3930_v24 = vpop.f32.mrb[41].mxu1 }
0x1c0e   :  { %v3931_v23 = vadd.f32 %v4430_v25, %v3930_v24 }
0x1c0f   :  { %v3940_v26 = vadd.f32 %v3936_v22, %v5729_v52 }
0x1c10   :  { %v3939_v29 = vadd.f32 %v3931_v23, %v5727_v51  ;;  %v3988_v51 = vld [vmem:[#allocation10 + $0x20] sm:$0xff] }
0x1c11   :  { %v3948_v31 = vsel %vm263_vm2, %v3940_v26, 0.0  ;;  %v4983_v47 = vpack.c.bf16 %v3989_v46, %v3988_v51 }
0x1c12   :  { %3949 = vadd.xlane.f32.xlu1 %v3948_v31  ;;  %v3945_v32 = vsel %vm263_vm2, %v3939_v29, 0.0 }
0x1c13   :  { %3946 = vadd.xlane.f32.xlu0 %v3945_v32  ;;  %4984 = vmatprep.subr.bf16.mxu0 %v4983_v47 }
0x1c14   :  { %4986 = vmatpush3.bf16.msra.mxu0 %v4983_v47 }
0x1c15   :  { %4988 = vmatprep.subr.bf16.mxu0 %v4987_v50 }
0x1c18   :  { %4990 = vmatpush3.bf16.msra.mxu0 %v4987_v50 }
0x1c9f   :  { %v3950_v62 = vpop.xlane.xlu1 %3949 }
0x1ca0   :  { %v3952_v33 = vmul.f32 0.03125, %v3950_v62  ;;  %v3947_v35 = vpop.xlane.xlu0 %3946  ;;  %v4242_v62 = vld [vmem:[%s5994_s20] sm:$0xff] }
0x1ca1   :  { %v3951_v44 = vmul.f32 0.03125, %v3947_v35  ;;  %v4244_v35 = vld [vmem:[%s5994_s20 + $0x10] sm:$0xff] }
0x1ca2   :  { %v3954_v36 = vsub.f32 %v3940_v26, %v3952_v33  ;;  %v4243_v33 = vld [vmem:[%s5994_s20 + $0x8] sm:$0xff] }
0x1ca3   :  { %v3953_v37 = vsub.f32 %v3939_v29, %v3951_v44  ;;  %v5256_v44 = vmov 0.0|0.0  }
0x1ca4   :  { %v3956_v43 = vmul.f32 %v3954_v36, %v3954_v36  ;;  %4999 = vmatprep.subr.bf16.mxu0 %v5256_v44 }
0x1ca5   :  { %v3955_v40 = vmul.f32 %v3953_v37, %v3953_v37 }
0x1ca6   :  { %v3960_v52 = vsel %vm263_vm2, %v3956_v43, 0.0 }
0x1ca7   :  { %v3957_v41 = vsel %vm263_vm2, %v3955_v40, 0.0 }
0x1ca8   :  { %3958 = vadd.xlane.f32.xlu0 %v3957_v41 }
0x1cac   :  { %3961 = vadd.xlane.f32.xlu0 %v3960_v52 }
0x1d35   :  { %v3959_v55 = vpop.xlane.xlu0 %3958 }
0x1d36   :  { %v3963_v56 = vmul.f32 0.03125, %v3959_v55 }
0x1d38   :  { %v3965_v58 = vadd.f32 1e-05, %v3963_v56 }
0x1d39   :  { %v3962_v1 = vpop.xlane.xlu0 %3961 }
0x1d3a   :  { %5093 = vrsqrt.f32 %v3965_v58  ;;  %v3964_v59 = vmul.f32 0.03125, %v3962_v1 }
0x1d3c   :  { %v3966_v63 = vadd.f32 1e-05, %v3964_v59 }
0x1d3e   :  { %5095 = vrsqrt.f32 %v3966_v63 }
0x1d44   :  { %v5094_v0 = vpop.eup %5093 }
0x1d45   :  { %v3969_v38 = vmul.f32 %v5094_v0, %v3953_v37  ;;  %v4245_v37 = vld [vmem:[%s5994_s20 + $0x18] sm:$0xff] }
0x1d46   :  { %v5003_v40 = vpack.c.bf16 %v4245_v37, %v4244_v35 }
0x1d47   :  { %v3977_v3 = vmul.f32 %v4435_v2, %v3969_v38 }
0x1d48   :  { %v5096_v4 = vpop.eup %5095 }
0x1d49   :  { %v3970_v8 = vmul.f32 %v5096_v4, %v3954_v36  ;;  %v3985_v5 = vadd.f32 %v4436_v42, %v3977_v3  ;;  %v5000_v36 = vpack.c.bf16 %v4243_v33, %v4242_v62 }
0x1d4b   :  { %v3978_v6 = vmul.f32 %v4435_v2, %v3970_v8  ;;  %4878 = vmatprep.mubr.msk.f32.mxu0 %vm263_vm2, %v3985_v5 }
0x1d4d   :  { %v3986_v7 = vadd.f32 %v4436_v42, %v3978_v6 }
0x1d4f   :  { %4879 = vmatmul.mubr.msk.f32.vlgmr.msra.gmra.mrb[44].mxu0 %vm263_vm2, %v3986_v7 }
0x1d50   :  { %4900 = vmatprep.mubr.msk.f32.mxu0 %vm5250_vm3, %v5249_v30  ;;  %v4442_v30 = vld [vmem:[%s5989_s15 + $0x1] ss:$0 sm:$0xff]  ;;  %5001 = vmatpush3.bf16.msra.mxu0 %v5000_v36 }
0x1d51   :  { %5002 = vmatprep.subr.bf16.mxu0 %v5256_v44 }
0x1d54   :  { %5004 = vmatpush3.bf16.msra.mxu0 %v5003_v40 }
0x1e22   :  { %v4880_v10 = vpop.f32.mrb[44].mxu0 }
0x1e23   :  { %v4078_v13 = vadd.f32 %v4880_v10, %v4438_v12  ;;  %v4072_v39 = vpop.f32.mrb[45].mxu0 }
0x1e24   :  { %v4073_v14 = vadd.f32 %v4438_v12, %v4072_v39 }
0x1e25   :  { %v4082_v16 = vmax.f32 %v4078_v13, 0.0  ;;  %v4449_v13 = vld [vmem:[#allocation2] ss:$0 sm:$0xff] }
0x1e26   :  { %v4081_v15 = vmax.f32 %v4073_v14, 0.0 }
0x1e28   :  { %4889 = vmatprep.mubr.msk.f32.mxu1 %vm263_vm2, %v4081_v15 }
0x1e29   :  { %4890 = vmatmul.mubr.msk.f32.vlgmr.msra.gmra.mrb[42].mxu1 %vm263_vm2, %v4082_v16 }
0x1efc   :  { %v4891_v17 = vpop.f32.mrb[42].mxu1 }
0x1efd   :  { %v4174_v18 = vadd.f32 %v4891_v17, %v4442_v30  ;;  %v4168_v60 = vpop.f32.mrb[43].mxu1 }
0x1efe   :  { %v4169_v19 = vadd.f32 %v4442_v30, %v4168_v60 }
0x1eff   :  { %v4178_v57 = vadd.f32 %v4174_v18, %v3986_v7 }
0x1f00   :  { %v4177_v20 = vadd.f32 %v4169_v19, %v3985_v5 }
0x1f01   :  { %v4186_v61 = vsel %vm263_vm2, %v4178_v57, 0.0 }
0x1f02   :  { %4187 = vadd.xlane.f32.xlu1 %v4186_v61  ;;  %v4183_v21 = vsel %vm263_vm2, %v4177_v20, 0.0 }
0x1f03   :  { %4184 = vadd.xlane.f32.xlu0 %v4183_v21 }
0x1f8f   :  { %v4188_v28 = vpop.xlane.xlu1 %4187 }
0x1f90   :  { %v4190_v25 = vmul.f32 0.03125, %v4188_v28  ;;  %v4185_v27 = vpop.xlane.xlu0 %4184 }
0x1f91   :  { %v4189_v22 = vmul.f32 0.03125, %v4185_v27 }
0x1f92   :  { %v4192_v24 = vsub.f32 %v4178_v57, %v4190_v25 }
0x1f93   :  { %v4191_v23 = vsub.f32 %v4177_v20, %v4189_v22 }
0x1f94   :  { %v4194_v26 = vmul.f32 %v4192_v24, %v4192_v24 }
0x1f95   :  { %v4193_v29 = vmul.f32 %v4191_v23, %v4191_v23 }
0x1f96   :  { %v4198_v31 = vsel %vm263_vm2, %v4194_v26, 0.0 }
0x1f97   :  { %4199 = vadd.xlane.f32.xlu1 %v4198_v31  ;;  %v4195_v32 = vsel %vm263_vm2, %v4193_v29, 0.0 }
0x1f98   :  { %4196 = vadd.xlane.f32.xlu0 %v4195_v32 }
0x2024   :  { %v4200_v41 = vpop.xlane.xlu1 %4199 }
0x2025   :  { %v4202_v43 = vmul.f32 0.03125, %v4200_v41  ;;  %v4197_v52 = vpop.xlane.xlu0 %4196 }
0x2026   :  { %v4201_v51 = vmul.f32 0.03125, %v4197_v52 }
0x2027   :  { %v4204_v46 = vadd.f32 1e-05, %v4202_v43 }
0x2028   :  { %v4203_v47 = vadd.f32 1e-05, %v4201_v51 }
0x2029   :  { %5097 = vrsqrt.f32 %v4204_v46 }
0x202a   :  { %5099 = vrsqrt.f32 %v4203_v47 }
0x2033   :  { %v5098_v48 = vpop.eup %5097 }
0x2034   :  { %v5100_v50 = vpop.eup %5099  ;;  %v4208_v53 = vmul.f32 %v5098_v48, %v4192_v24 }
0x2035   :  { %v4207_v54 = vmul.f32 %v5100_v50, %v4191_v23 }
0x2036   :  { %v4216_v55 = vmul.f32 %v4447_v49, %v4208_v53 }
0x2037   :  { %v4215_v56 = vmul.f32 %v4447_v49, %v4207_v54 }
0x2038   :  { %v4224_v58 = vadd.f32 %v4448_v45, %v4216_v55 }
0x2039   :  { %v4223_v1 = vadd.f32 %v4448_v45, %v4215_v56 }
0x203a   :  { %v4232_v59 = vsel %vm263_vm2, %v4224_v58, 0.0 }
0x203b   :  { %v4225_v63 = vsel %vm263_vm2, %v4223_v1, 0.0  ;;  %v4233_v0 = vrot.slane %v4232_v59, 4 }
0x203c   :  { %v4226_v2 = vrot.slane %v4225_v63, 4 }
0x203d   :  { %v4234_v38 = vadd.f32 %v4233_v0, %v4232_v59 }
0x203e   :  { %v4227_v42 = vadd.f32 %v4226_v2, %v4225_v63 }
0x203f   :  { %v4235_v3 = vrot.slane %v4234_v38, 2 }
0x2040   :  { %v4228_v4 = vrot.slane %v4227_v42, 2 }
0x2041   :  { %v4236_v8 = vadd.f32 %v4235_v3, %v4234_v38 }
0x2042   :  { %v4229_v5 = vadd.f32 %v4228_v4, %v4227_v42 }
0x2043   :  { %v4237_v6 = vrot.slane %v4236_v8, 1 }
0x2044   :  { %v4230_v7 = vrot.slane %v4229_v5, 1 }
0x2045   :  { %v4238_v34 = vadd.f32 %v4237_v6, %v4236_v8 }
0x2046   :  { %v4231_v9 = vadd.f32 %v4230_v7, %v4229_v5 }
0x2047   :  { %v4241_v11 = vmul.f32 0.125, %v4238_v34 }
0x2048   :  { %v4240_v12 = vmul.f32 0.125, %v4231_v9 }
0x204a   :  { %v4256_v10 = vsel %vm4255_vm7, %v4241_v11, %v4240_v12 }
0x204b   :  { %4901 = vmatmul.mubr.msk.f32.vlgmr.msra.gmra.mrb[46].mxu0 %vm263_vm2, %v4256_v10 }
0x211e   :  { %v4325_v39 = vpop.f32.mrb[46].mxu0 }
0x211f   :  { %v4326_v14 = vadd.f32 %v4449_v13, %v4325_v39  ;;  %v4902_v15 = vpop.f32.mrb[47].mxu0 }
0x2121   :  { %4330 = vst.msk [vmem:[%s6017_s3] sm:$0x3] %vm4329_vm8, %v4326_v14 }
0x2122   :  { %4335 = vsyncpa [#allocation4], 1 }
0x2123   :  { %4336 = vsyncpa [#allocation6], 1 }
0x2124   :  { %4337 = vsyncpa [#allocation9], 1 }
0x2125   :  { %4338 = vsyncpa [#allocation12], 1 }

</bundles_post_ra>
